<compile_context>
chip_gen: v5e
topology: v5e:2x2
jax: 0.10.0
libtpu: 0.0.40
codegen_flags: <defaults>
</compile_context>

<pallas_src>
import jax
import jax.numpy as jnp
from jax.experimental import pallas as pl
from jax.experimental.pallas import tpu as pltpu


# ----------------------------------------------------------------------------
# Fused forward kernel
# ----------------------------------------------------------------------------
def _make_fused_kernel(T, N, F, H, n_layers):
    """T = LSTM time steps (== module batch B), N = LSTM batch (== seq_len-1),
    F = n_features, H = n_hidden."""
    TN = T * N
    B = T                      # module batch size
    row0 = TN - B              # first flat row read by lstm_out.view(S-1, B, H)[-1]

    def kernel(*refs):
        it = iter(refs)
        convp_ref = next(it)                   # (3,) SMEM: w0, w1, conv bias
        x0_ref = next(it)                      # (TN, F) VMEM  (tap x[:, :-1])
        x1_ref = next(it)                      # (TN, F) VMEM  (tap x[:, 1:])
        layers = [(next(it), next(it), next(it)) for _ in range(n_layers)]
        lw_ref = next(it)                      # (H, 1) VMEM
        lb_ref = next(it)                      # (1, 1) VMEM
        o_ref = next(it)                       # (B, 1) output
        yflat = next(it)                       # (TN, H) VMEM scratch (per-layer output)

        w0 = convp_ref[0]
        w1 = convp_ref[1]
        cb = convp_ref[2]
        # Conv1d(in=1, out=1, kernel_size=2), fused element-wise.
        cur = w0 * x0_ref[...] + w1 * x1_ref[...] + cb          # (TN, F)

        for l, (wih_ref, whh_ref, b_ref) in enumerate(layers):
            last_layer = l == n_layers - 1
            whh_t = whh_ref[...]                                 # (H, 4H)
            # Hoisted input projection + single bias broadcast (one matmul/layer).
            x_proj = (jnp.dot(cur, wih_ref[...],
                              preferred_element_type=jnp.float32)
                      + b_ref[...])                              # (TN, 4H)
            # Recurrent state stays in registers (plain values).
            h = jnp.zeros((N, H), jnp.float32)
            c = jnp.zeros((N, H), jnp.float32)
            for t in range(T):                                   # T is small & static
                gates = (x_proj[t * N:(t + 1) * N, :]
                         + jnp.dot(h, whh_t,
                                   preferred_element_type=jnp.float32))  # (N, 4H)
                i_g = jax.nn.sigmoid(gates[:, 0 * H:1 * H])
                f_g = jax.nn.sigmoid(gates[:, 1 * H:2 * H])
                g_g = jnp.tanh(gates[:, 2 * H:3 * H])
                o_g = jax.nn.sigmoid(gates[:, 3 * H:4 * H])
                c = f_g * c + i_g * g_g
                h = o_g * jnp.tanh(c)
                # Intermediate layers need the full (TN, H) output for the next
                # layer's hoisted projection; the last layer only stores the rows
                # that the PyTorch `.view(S-1, B, H)[-1]` reinterpretation reads.
                if (not last_layer) or ((t + 1) * N > row0):
                    yflat[pl.ds(t * N, N), :] = h
            if not last_layer:
                cur = yflat[...]                                 # (TN, H)

        last = yflat[pl.ds(row0, B), :]                          # (B, H)
        o_ref[...] = (jnp.dot(last, lw_ref[...],
                              preferred_element_type=jnp.float32)
                      + lb_ref[...])                             # (B, 1)

    return kernel


# ----------------------------------------------------------------------------
# Module wrapper (forward-pass semantics of the PyTorch MotorPredict)
# ----------------------------------------------------------------------------
class MotorPredictPallas:
    def __init__(self, n_features, n_hidden, seq_len, n_layers, key):
        self.n_features = n_features
        self.n_hidden = n_hidden
        self.seq_len = seq_len
        self.n_layers = n_layers

        keys = jax.random.split(key, 4 + 4 * n_layers)
        ki = iter(keys)

        def unif(k, shape, fan_in):
            bound = 1.0 / jnp.sqrt(jnp.float32(fan_in))
            return jax.random.uniform(k, shape, jnp.float32, -bound, bound)

        # Conv1d(1, 1, kernel_size=2)
        self.conv_w = unif(next(ki), (2,), 2)
        self.conv_b = unif(next(ki), (1,), 2)

        # LSTM weights, stored PRE-TRANSPOSED (no in-kernel transpose).
        self.w_ih_t, self.w_hh_t, self.bias = [], [], []
        for l in range(n_layers):
            in_l = n_features if l == 0 else n_hidden
            self.w_ih_t.append(unif(next(ki), (4 * n_hidden, in_l), n_hidden).T)   # (in, 4H)
            self.w_hh_t.append(unif(next(ki), (4 * n_hidden, n_hidden), n_hidden).T)  # (H, 4H)
            b_ih = unif(next(ki), (4 * n_hidden,), n_hidden)
            b_hh = unif(next(ki), (4 * n_hidden,), n_hidden)
            self.bias.append((b_ih + b_hh).reshape(1, 4 * n_hidden))

        # Linear(n_hidden, 1), pre-transposed.
        self.lin_w_t = unif(next(ki), (1, n_hidden), n_hidden).T                    # (H, 1)
        self.lin_b = unif(next(ki), (1,), n_hidden).reshape(1, 1)

    def forward(self, sequences):
        B = sequences.shape[0]
        x = sequences.reshape(B, -1).astype(jnp.float32)
        L = x.shape[1]
        T, N, F, H = B, self.seq_len - 1, self.n_features, self.n_hidden
        assert L - 1 == N * F, "conv output length must equal (seq_len-1)*n_features"

        # Layout plumbing (XLA, one-time): the two k=2 conv taps, reinterpreted
        # straight into the LSTM's flat (time*batch, feature) layout.
        x0 = x[:, :L - 1].reshape(T * N, F)
        x1 = x[:, 1:].reshape(T * N, F)
        convp = jnp.concatenate([self.conv_w, self.conv_b]).astype(jnp.float32)  # (3,)

        args = [convp, x0, x1]
        for l in range(self.n_layers):
            args += [self.w_ih_t[l], self.w_hh_t[l], self.bias[l]]
        args += [self.lin_w_t, self.lin_b]

        kernel = _make_fused_kernel(T, N, F, H, self.n_layers)
        in_specs = ([pl.BlockSpec(memory_space=pltpu.MemorySpace.SMEM)]
                    + [pl.BlockSpec(memory_space=pltpu.MemorySpace.VMEM)]
                    * (len(args) - 1))
        return pl.pallas_call(
            kernel,
            out_shape=jax.ShapeDtypeStruct((B, 1), jnp.float32),
            in_specs=in_specs,
            out_specs=pl.BlockSpec(memory_space=pltpu.MemorySpace.VMEM),
            scratch_shapes=[pltpu.VMEM((T * N, H), jnp.float32)],
        )(*args)


# ----------------------------------------------------------------------------
# Pure-JAX reference for correctness check
# ----------------------------------------------------------------------------
def reference_forward(model, sequences):
    B = sequences.shape[0]
    x = sequences.reshape(B, -1).astype(jnp.float32)
    conv = model.conv_w[0] * x[:, :-1] + model.conv_w[1] * x[:, 1:] + model.conv_b[0]
    S, F, H = model.seq_len, model.n_features, model.n_hidden
    h_seq = conv.reshape(B, S - 1, F)          # (T=B, N=S-1, F)
    for l in range(model.n_layers):
        N = h_seq.shape[1]
        h = jnp.zeros((N, H), jnp.float32)
        c = jnp.zeros((N, H), jnp.float32)
        outs = []
        for t in range(h_seq.shape[0]):
            gates = h_seq[t] @ model.w_ih_t[l] + h @ model.w_hh_t[l] + model.bias[l]
            i = jax.nn.sigmoid(gates[:, 0 * H:1 * H])
            f = jax.nn.sigmoid(gates[:, 1 * H:2 * H])
            g = jnp.tanh(gates[:, 2 * H:3 * H])
            o = jax.nn.sigmoid(gates[:, 3 * H:4 * H])
            c = f * c + i * g
            h = o * jnp.tanh(c)
            outs.append(h)
        h_seq = jnp.stack(outs, axis=0)
    last = h_seq.reshape(S - 1, B, H)[-1]      # raw memory reinterpretation, as in PyTorch
    return last @ model.lin_w_t + model.lin_b


if __name__ == "__main__":
    n_features, n_hidden, seq_len, n_layers = 4, 32, 8, 2
    B = 8
    L = (seq_len - 1) * n_features + 1   # 29, so (L-1) == (seq_len-1)*n_features

    key = jax.random.PRNGKey(0)
    kx, kp = jax.random.split(key)
    x = jax.random.normal(kx, (B, L), dtype=jnp.float32)

    model = MotorPredictPallas(n_features, n_hidden, seq_len, n_layers, kp)
    fwd = jax.jit(model.forward)
    y = fwd(x)
    jax.block_until_ready(y)
    assert y.shape == (B, 1)

    y_ref = reference_forward(model, x)
    assert jnp.allclose(y, y_ref, atol=1e-3, rtol=1e-3), (y, y_ref)

    print("KERNEL_OK")
</pallas_src>

<mosaic_0001>
module attributes {stable_mosaic.version = 11 : i64} {
  func.func @kernel(%arg0: memref<3xf32, #tpu.memory_space<smem>>, %arg1: memref<56x4xf32, #tpu.memory_space<vmem>>, %arg2: memref<56x4xf32, #tpu.memory_space<vmem>>, %arg3: memref<4x128xf32, #tpu.memory_space<vmem>>, %arg4: memref<32x128xf32, #tpu.memory_space<vmem>>, %arg5: memref<1x128xf32, #tpu.memory_space<vmem>>, %arg6: memref<32x128xf32, #tpu.memory_space<vmem>>, %arg7: memref<32x128xf32, #tpu.memory_space<vmem>>, %arg8: memref<1x128xf32, #tpu.memory_space<vmem>>, %arg9: memref<32x1xf32, #tpu.memory_space<vmem>>, %arg10: memref<1x1xf32, #tpu.memory_space<vmem>>, %arg11: memref<8x1xf32, #tpu.memory_space<vmem>>, %arg12: memref<56x32xf32, #tpu.memory_space<vmem>>) attributes {dimension_semantics = [], scalar_prefetch = 0 : i64, scratch_operands = 1 : i64, tpu.core_type = #tpu.core_type<tc>} {
    %c0 = arith.constant 0 : index
    %0 = memref.load %arg0[%c0] : memref<3xf32, #tpu.memory_space<smem>>
    %c1 = arith.constant 1 : index
    %1 = memref.load %arg0[%c1] : memref<3xf32, #tpu.memory_space<smem>>
    %c2 = arith.constant 2 : index
    %2 = memref.load %arg0[%c2] : memref<3xf32, #tpu.memory_space<smem>>
    %c0_0 = arith.constant 0 : index
    %c0_1 = arith.constant 0 : index
    %3 = vector.load %arg1[%c0_0, %c0_1] : memref<56x4xf32, #tpu.memory_space<vmem>>, vector<56x4xf32>
    %4 = vector.broadcast %0 : f32 to vector<56x4xf32>
    %5 = arith.mulf %4, %3 : vector<56x4xf32>
    %c0_2 = arith.constant 0 : index
    %c0_3 = arith.constant 0 : index
    %6 = vector.load %arg2[%c0_2, %c0_3] : memref<56x4xf32, #tpu.memory_space<vmem>>, vector<56x4xf32>
    %7 = vector.broadcast %1 : f32 to vector<56x4xf32>
    %8 = arith.mulf %7, %6 : vector<56x4xf32>
    %9 = arith.addf %5, %8 : vector<56x4xf32>
    %10 = vector.broadcast %2 : f32 to vector<56x4xf32>
    %11 = arith.addf %9, %10 : vector<56x4xf32>
    %c0_4 = arith.constant 0 : index
    %c0_5 = arith.constant 0 : index
    %12 = vector.load %arg4[%c0_4, %c0_5] : memref<32x128xf32, #tpu.memory_space<vmem>>, vector<32x128xf32>
    %c0_6 = arith.constant 0 : index
    %c0_7 = arith.constant 0 : index
    %13 = vector.load %arg3[%c0_6, %c0_7] : memref<4x128xf32, #tpu.memory_space<vmem>>, vector<4x128xf32>
    %cst = arith.constant dense<0.000000e+00> : vector<56x128xf32>
    %14 = tpu.matmul %11, %13, %cst {dimension_numbers = #tpu.dot_dimension_numbers<[1], [0], [0], [1], [0, 0, 1, 1], [], []>} : vector<56x4xf32>, vector<4x128xf32>, vector<56x128xf32> -> vector<56x128xf32>
    %c0_8 = arith.constant 0 : index
    %c0_9 = arith.constant 0 : index
    %15 = vector.load %arg5[%c0_8, %c0_9] : memref<1x128xf32, #tpu.memory_space<vmem>>, vector<1x128xf32>
    %16 = vector.broadcast %15 : vector<1x128xf32> to vector<56x128xf32>
    %17 = arith.addf %14, %16 : vector<56x128xf32>
    %cst_10 = arith.constant 0.000000e+00 : f32
    %18 = vector.broadcast %cst_10 : f32 to vector<7x32xf32>
    %cst_11 = arith.constant 0.000000e+00 : f32
    %19 = vector.broadcast %cst_11 : f32 to vector<7x32xf32>
    %20 = vector.extract_strided_slice %17 {offsets = [0, 0], sizes = [7, 128], strides = [1, 1]} : vector<56x128xf32> to vector<7x128xf32>
    %cst_12 = arith.constant dense<0.000000e+00> : vector<7x128xf32>
    %21 = tpu.matmul %18, %12, %cst_12 {dimension_numbers = #tpu.dot_dimension_numbers<[1], [0], [0], [1], [0, 0, 1, 1], [], []>} : vector<7x32xf32>, vector<32x128xf32>, vector<7x128xf32> -> vector<7x128xf32>
    %22 = arith.addf %20, %21 : vector<7x128xf32>
    %23 = vector.extract_strided_slice %22 {offsets = [0, 0], sizes = [7, 32], strides = [1, 1]} : vector<7x128xf32> to vector<7x32xf32>
    %24 = arith.negf %23 : vector<7x32xf32>
    %25 = math.exp %24 : vector<7x32xf32>
    %cst_13 = arith.constant 1.000000e+00 : f32
    %26 = vector.broadcast %cst_13 : f32 to vector<7x32xf32>
    %27 = arith.addf %26, %25 : vector<7x32xf32>
    %28 = arith.divf %26, %27 : vector<7x32xf32>
    %29 = vector.extract_strided_slice %22 {offsets = [0, 32], sizes = [7, 32], strides = [1, 1]} : vector<7x128xf32> to vector<7x32xf32>
    %30 = arith.negf %29 : vector<7x32xf32>
    %31 = math.exp %30 : vector<7x32xf32>
    %cst_14 = arith.constant 1.000000e+00 : f32
    %32 = vector.broadcast %cst_14 : f32 to vector<7x32xf32>
    %33 = arith.addf %32, %31 : vector<7x32xf32>
    %34 = arith.divf %32, %33 : vector<7x32xf32>
    %35 = vector.extract_strided_slice %22 {offsets = [0, 64], sizes = [7, 32], strides = [1, 1]} : vector<7x128xf32> to vector<7x32xf32>
    %36 = math.tanh %35 : vector<7x32xf32>
    %37 = vector.extract_strided_slice %22 {offsets = [0, 96], sizes = [7, 32], strides = [1, 1]} : vector<7x128xf32> to vector<7x32xf32>
    %38 = arith.negf %37 : vector<7x32xf32>
    %39 = math.exp %38 : vector<7x32xf32>
    %cst_15 = arith.constant 1.000000e+00 : f32
    %40 = vector.broadcast %cst_15 : f32 to vector<7x32xf32>
    %41 = arith.addf %40, %39 : vector<7x32xf32>
    %42 = arith.divf %40, %41 : vector<7x32xf32>
    %43 = arith.mulf %34, %19 : vector<7x32xf32>
    %44 = arith.mulf %28, %36 : vector<7x32xf32>
    %45 = arith.addf %43, %44 : vector<7x32xf32>
    %46 = math.tanh %45 : vector<7x32xf32>
    %47 = arith.mulf %42, %46 : vector<7x32xf32>
    %c0_16 = arith.constant 0 : index
    %c0_17 = arith.constant 0 : index
    %48 = vector.load %arg12[%c0_16, %c0_17] : memref<56x32xf32, #tpu.memory_space<vmem>>, vector<7x32xf32>
    tpu.vector_store %arg12[%c0_16, %c0_17], %47 {strides = array<i32>} : memref<56x32xf32, #tpu.memory_space<vmem>>, vector<7x32xf32>,
    %49 = vector.extract_strided_slice %17 {offsets = [7, 0], sizes = [7, 128], strides = [1, 1]} : vector<56x128xf32> to vector<7x128xf32>
    %cst_18 = arith.constant dense<0.000000e+00> : vector<7x128xf32>
    %50 = tpu.matmul %47, %12, %cst_18 {dimension_numbers = #tpu.dot_dimension_numbers<[1], [0], [0], [1], [0, 0, 1, 1], [], []>} : vector<7x32xf32>, vector<32x128xf32>, vector<7x128xf32> -> vector<7x128xf32>
    %51 = arith.addf %49, %50 : vector<7x128xf32>
    %52 = vector.extract_strided_slice %51 {offsets = [0, 0], sizes = [7, 32], strides = [1, 1]} : vector<7x128xf32> to vector<7x32xf32>
    %53 = arith.negf %52 : vector<7x32xf32>
    %54 = math.exp %53 : vector<7x32xf32>
    %cst_19 = arith.constant 1.000000e+00 : f32
    %55 = vector.broadcast %cst_19 : f32 to vector<7x32xf32>
    %56 = arith.addf %55, %54 : vector<7x32xf32>
    %57 = arith.divf %55, %56 : vector<7x32xf32>
    %58 = vector.extract_strided_slice %51 {offsets = [0, 32], sizes = [7, 32], strides = [1, 1]} : vector<7x128xf32> to vector<7x32xf32>
    %59 = arith.negf %58 : vector<7x32xf32>
    %60 = math.exp %59 : vector<7x32xf32>
    %cst_20 = arith.constant 1.000000e+00 : f32
    %61 = vector.broadcast %cst_20 : f32 to vector<7x32xf32>
    %62 = arith.addf %61, %60 : vector<7x32xf32>
    %63 = arith.divf %61, %62 : vector<7x32xf32>
    %64 = vector.extract_strided_slice %51 {offsets = [0, 64], sizes = [7, 32], strides = [1, 1]} : vector<7x128xf32> to vector<7x32xf32>
    %65 = math.tanh %64 : vector<7x32xf32>
    %66 = vector.extract_strided_slice %51 {offsets = [0, 96], sizes = [7, 32], strides = [1, 1]} : vector<7x128xf32> to vector<7x32xf32>
    %67 = arith.negf %66 : vector<7x32xf32>
    %68 = math.exp %67 : vector<7x32xf32>
    %cst_21 = arith.constant 1.000000e+00 : f32
    %69 = vector.broadcast %cst_21 : f32 to vector<7x32xf32>
    %70 = arith.addf %69, %68 : vector<7x32xf32>
    %71 = arith.divf %69, %70 : vector<7x32xf32>
    %72 = arith.mulf %63, %45 : vector<7x32xf32>
    %73 = arith.mulf %57, %65 : vector<7x32xf32>
    %74 = arith.addf %72, %73 : vector<7x32xf32>
    %75 = math.tanh %74 : vector<7x32xf32>
    %76 = arith.mulf %71, %75 : vector<7x32xf32>
    %c7 = arith.constant 7 : index
    %c0_22 = arith.constant 0 : index
    %77 = vector.load %arg12[%c7, %c0_22] : memref<56x32xf32, #tpu.memory_space<vmem>>, vector<7x32xf32>
    tpu.vector_store %arg12[%c7, %c0_22], %76 {strides = array<i32>} : memref<56x32xf32, #tpu.memory_space<vmem>>, vector<7x32xf32>,
    %78 = vector.extract_strided_slice %17 {offsets = [14, 0], sizes = [7, 128], strides = [1, 1]} : vector<56x128xf32> to vector<7x128xf32>
    %cst_23 = arith.constant dense<0.000000e+00> : vector<7x128xf32>
    %79 = tpu.matmul %76, %12, %cst_23 {dimension_numbers = #tpu.dot_dimension_numbers<[1], [0], [0], [1], [0, 0, 1, 1], [], []>} : vector<7x32xf32>, vector<32x128xf32>, vector<7x128xf32> -> vector<7x128xf32>
    %80 = arith.addf %78, %79 : vector<7x128xf32>
    %81 = vector.extract_strided_slice %80 {offsets = [0, 0], sizes = [7, 32], strides = [1, 1]} : vector<7x128xf32> to vector<7x32xf32>
    %82 = arith.negf %81 : vector<7x32xf32>
    %83 = math.exp %82 : vector<7x32xf32>
    %cst_24 = arith.constant 1.000000e+00 : f32
    %84 = vector.broadcast %cst_24 : f32 to vector<7x32xf32>
    %85 = arith.addf %84, %83 : vector<7x32xf32>
    %86 = arith.divf %84, %85 : vector<7x32xf32>
    %87 = vector.extract_strided_slice %80 {offsets = [0, 32], sizes = [7, 32], strides = [1, 1]} : vector<7x128xf32> to vector<7x32xf32>
    %88 = arith.negf %87 : vector<7x32xf32>
    %89 = math.exp %88 : vector<7x32xf32>
    %cst_25 = arith.constant 1.000000e+00 : f32
    %90 = vector.broadcast %cst_25 : f32 to vector<7x32xf32>
    %91 = arith.addf %90, %89 : vector<7x32xf32>
    %92 = arith.divf %90, %91 : vector<7x32xf32>
    %93 = vector.extract_strided_slice %80 {offsets = [0, 64], sizes = [7, 32], strides = [1, 1]} : vector<7x128xf32> to vector<7x32xf32>
    %94 = math.tanh %93 : vector<7x32xf32>
    %95 = vector.extract_strided_slice %80 {offsets = [0, 96], sizes = [7, 32], strides = [1, 1]} : vector<7x128xf32> to vector<7x32xf32>
    %96 = arith.negf %95 : vector<7x32xf32>
    %97 = math.exp %96 : vector<7x32xf32>
    %cst_26 = arith.constant 1.000000e+00 : f32
    %98 = vector.broadcast %cst_26 : f32 to vector<7x32xf32>
    %99 = arith.addf %98, %97 : vector<7x32xf32>
    %100 = arith.divf %98, %99 : vector<7x32xf32>
    %101 = arith.mulf %92, %74 : vector<7x32xf32>
    %102 = arith.mulf %86, %94 : vector<7x32xf32>
    %103 = arith.addf %101, %102 : vector<7x32xf32>
    %104 = math.tanh %103 : vector<7x32xf32>
    %105 = arith.mulf %100, %104 : vector<7x32xf32>
    %c14 = arith.constant 14 : index
    %c0_27 = arith.constant 0 : index
    %106 = vector.load %arg12[%c14, %c0_27] : memref<56x32xf32, #tpu.memory_space<vmem>>, vector<7x32xf32>
    tpu.vector_store %arg12[%c14, %c0_27], %105 {strides = array<i32>} : memref<56x32xf32, #tpu.memory_space<vmem>>, vector<7x32xf32>,
    %107 = vector.extract_strided_slice %17 {offsets = [21, 0], sizes = [7, 128], strides = [1, 1]} : vector<56x128xf32> to vector<7x128xf32>
    %cst_28 = arith.constant dense<0.000000e+00> : vector<7x128xf32>
    %108 = tpu.matmul %105, %12, %cst_28 {dimension_numbers = #tpu.dot_dimension_numbers<[1], [0], [0], [1], [0, 0, 1, 1], [], []>} : vector<7x32xf32>, vector<32x128xf32>, vector<7x128xf32> -> vector<7x128xf32>
    %109 = arith.addf %107, %108 : vector<7x128xf32>
    %110 = vector.extract_strided_slice %109 {offsets = [0, 0], sizes = [7, 32], strides = [1, 1]} : vector<7x128xf32> to vector<7x32xf32>
    %111 = arith.negf %110 : vector<7x32xf32>
    %112 = math.exp %111 : vector<7x32xf32>
    %cst_29 = arith.constant 1.000000e+00 : f32
    %113 = vector.broadcast %cst_29 : f32 to vector<7x32xf32>
    %114 = arith.addf %113, %112 : vector<7x32xf32>
    %115 = arith.divf %113, %114 : vector<7x32xf32>
    %116 = vector.extract_strided_slice %109 {offsets = [0, 32], sizes = [7, 32], strides = [1, 1]} : vector<7x128xf32> to vector<7x32xf32>
    %117 = arith.negf %116 : vector<7x32xf32>
    %118 = math.exp %117 : vector<7x32xf32>
    %cst_30 = arith.constant 1.000000e+00 : f32
    %119 = vector.broadcast %cst_30 : f32 to vector<7x32xf32>
    %120 = arith.addf %119, %118 : vector<7x32xf32>
    %121 = arith.divf %119, %120 : vector<7x32xf32>
    %122 = vector.extract_strided_slice %109 {offsets = [0, 64], sizes = [7, 32], strides = [1, 1]} : vector<7x128xf32> to vector<7x32xf32>
    %123 = math.tanh %122 : vector<7x32xf32>
    %124 = vector.extract_strided_slice %109 {offsets = [0, 96], sizes = [7, 32], strides = [1, 1]} : vector<7x128xf32> to vector<7x32xf32>
    %125 = arith.negf %124 : vector<7x32xf32>
    %126 = math.exp %125 : vector<7x32xf32>
    %cst_31 = arith.constant 1.000000e+00 : f32
    %127 = vector.broadcast %cst_31 : f32 to vector<7x32xf32>
    %128 = arith.addf %127, %126 : vector<7x32xf32>
    %129 = arith.divf %127, %128 : vector<7x32xf32>
    %130 = arith.mulf %121, %103 : vector<7x32xf32>
    %131 = arith.mulf %115, %123 : vector<7x32xf32>
    %132 = arith.addf %130, %131 : vector<7x32xf32>
    %133 = math.tanh %132 : vector<7x32xf32>
    %134 = arith.mulf %129, %133 : vector<7x32xf32>
    %c21 = arith.constant 21 : index
    %c0_32 = arith.constant 0 : index
    %135 = vector.load %arg12[%c21, %c0_32] : memref<56x32xf32, #tpu.memory_space<vmem>>, vector<7x32xf32>
    tpu.vector_store %arg12[%c21, %c0_32], %134 {strides = array<i32>} : memref<56x32xf32, #tpu.memory_space<vmem>>, vector<7x32xf32>,
    %136 = vector.extract_strided_slice %17 {offsets = [28, 0], sizes = [7, 128], strides = [1, 1]} : vector<56x128xf32> to vector<7x128xf32>
    %cst_33 = arith.constant dense<0.000000e+00> : vector<7x128xf32>
    %137 = tpu.matmul %134, %12, %cst_33 {dimension_numbers = #tpu.dot_dimension_numbers<[1], [0], [0], [1], [0, 0, 1, 1], [], []>} : vector<7x32xf32>, vector<32x128xf32>, vector<7x128xf32> -> vector<7x128xf32>
    %138 = arith.addf %136, %137 : vector<7x128xf32>
    %139 = vector.extract_strided_slice %138 {offsets = [0, 0], sizes = [7, 32], strides = [1, 1]} : vector<7x128xf32> to vector<7x32xf32>
    %140 = arith.negf %139 : vector<7x32xf32>
    %141 = math.exp %140 : vector<7x32xf32>
    %cst_34 = arith.constant 1.000000e+00 : f32
    %142 = vector.broadcast %cst_34 : f32 to vector<7x32xf32>
    %143 = arith.addf %142, %141 : vector<7x32xf32>
    %144 = arith.divf %142, %143 : vector<7x32xf32>
    %145 = vector.extract_strided_slice %138 {offsets = [0, 32], sizes = [7, 32], strides = [1, 1]} : vector<7x128xf32> to vector<7x32xf32>
    %146 = arith.negf %145 : vector<7x32xf32>
    %147 = math.exp %146 : vector<7x32xf32>
    %cst_35 = arith.constant 1.000000e+00 : f32
    %148 = vector.broadcast %cst_35 : f32 to vector<7x32xf32>
    %149 = arith.addf %148, %147 : vector<7x32xf32>
    %150 = arith.divf %148, %149 : vector<7x32xf32>
    %151 = vector.extract_strided_slice %138 {offsets = [0, 64], sizes = [7, 32], strides = [1, 1]} : vector<7x128xf32> to vector<7x32xf32>
    %152 = math.tanh %151 : vector<7x32xf32>
    %153 = vector.extract_strided_slice %138 {offsets = [0, 96], sizes = [7, 32], strides = [1, 1]} : vector<7x128xf32> to vector<7x32xf32>
    %154 = arith.negf %153 : vector<7x32xf32>
    %155 = math.exp %154 : vector<7x32xf32>
    %cst_36 = arith.constant 1.000000e+00 : f32
    %156 = vector.broadcast %cst_36 : f32 to vector<7x32xf32>
    %157 = arith.addf %156, %155 : vector<7x32xf32>
    %158 = arith.divf %156, %157 : vector<7x32xf32>
    %159 = arith.mulf %150, %132 : vector<7x32xf32>
    %160 = arith.mulf %144, %152 : vector<7x32xf32>
    %161 = arith.addf %159, %160 : vector<7x32xf32>
    %162 = math.tanh %161 : vector<7x32xf32>
    %163 = arith.mulf %158, %162 : vector<7x32xf32>
    %c28 = arith.constant 28 : index
    %c0_37 = arith.constant 0 : index
    %164 = vector.load %arg12[%c28, %c0_37] : memref<56x32xf32, #tpu.memory_space<vmem>>, vector<7x32xf32>
    tpu.vector_store %arg12[%c28, %c0_37], %163 {strides = array<i32>} : memref<56x32xf32, #tpu.memory_space<vmem>>, vector<7x32xf32>,
    %165 = vector.extract_strided_slice %17 {offsets = [35, 0], sizes = [7, 128], strides = [1, 1]} : vector<56x128xf32> to vector<7x128xf32>
    %cst_38 = arith.constant dense<0.000000e+00> : vector<7x128xf32>
    %166 = tpu.matmul %163, %12, %cst_38 {dimension_numbers = #tpu.dot_dimension_numbers<[1], [0], [0], [1], [0, 0, 1, 1], [], []>} : vector<7x32xf32>, vector<32x128xf32>, vector<7x128xf32> -> vector<7x128xf32>
    %167 = arith.addf %165, %166 : vector<7x128xf32>
    %168 = vector.extract_strided_slice %167 {offsets = [0, 0], sizes = [7, 32], strides = [1, 1]} : vector<7x128xf32> to vector<7x32xf32>
    %169 = arith.negf %168 : vector<7x32xf32>
    %170 = math.exp %169 : vector<7x32xf32>
    %cst_39 = arith.constant 1.000000e+00 : f32
    %171 = vector.broadcast %cst_39 : f32 to vector<7x32xf32>
    %172 = arith.addf %171, %170 : vector<7x32xf32>
    %173 = arith.divf %171, %172 : vector<7x32xf32>
    %174 = vector.extract_strided_slice %167 {offsets = [0, 32], sizes = [7, 32], strides = [1, 1]} : vector<7x128xf32> to vector<7x32xf32>
    %175 = arith.negf %174 : vector<7x32xf32>
    %176 = math.exp %175 : vector<7x32xf32>
    %cst_40 = arith.constant 1.000000e+00 : f32
    %177 = vector.broadcast %cst_40 : f32 to vector<7x32xf32>
    %178 = arith.addf %177, %176 : vector<7x32xf32>
    %179 = arith.divf %177, %178 : vector<7x32xf32>
    %180 = vector.extract_strided_slice %167 {offsets = [0, 64], sizes = [7, 32], strides = [1, 1]} : vector<7x128xf32> to vector<7x32xf32>
    %181 = math.tanh %180 : vector<7x32xf32>
    %182 = vector.extract_strided_slice %167 {offsets = [0, 96], sizes = [7, 32], strides = [1, 1]} : vector<7x128xf32> to vector<7x32xf32>
    %183 = arith.negf %182 : vector<7x32xf32>
    %184 = math.exp %183 : vector<7x32xf32>
    %cst_41 = arith.constant 1.000000e+00 : f32
    %185 = vector.broadcast %cst_41 : f32 to vector<7x32xf32>
    %186 = arith.addf %185, %184 : vector<7x32xf32>
    %187 = arith.divf %185, %186 : vector<7x32xf32>
    %188 = arith.mulf %179, %161 : vector<7x32xf32>
    %189 = arith.mulf %173, %181 : vector<7x32xf32>
    %190 = arith.addf %188, %189 : vector<7x32xf32>
    %191 = math.tanh %190 : vector<7x32xf32>
    %192 = arith.mulf %187, %191 : vector<7x32xf32>
    %c35 = arith.constant 35 : index
    %c0_42 = arith.constant 0 : index
    %193 = vector.load %arg12[%c35, %c0_42] : memref<56x32xf32, #tpu.memory_space<vmem>>, vector<7x32xf32>
    tpu.vector_store %arg12[%c35, %c0_42], %192 {strides = array<i32>} : memref<56x32xf32, #tpu.memory_space<vmem>>, vector<7x32xf32>,
    %194 = vector.extract_strided_slice %17 {offsets = [42, 0], sizes = [7, 128], strides = [1, 1]} : vector<56x128xf32> to vector<7x128xf32>
    %cst_43 = arith.constant dense<0.000000e+00> : vector<7x128xf32>
    %195 = tpu.matmul %192, %12, %cst_43 {dimension_numbers = #tpu.dot_dimension_numbers<[1], [0], [0], [1], [0, 0, 1, 1], [], []>} : vector<7x32xf32>, vector<32x128xf32>, vector<7x128xf32> -> vector<7x128xf32>
    %196 = arith.addf %194, %195 : vector<7x128xf32>
    %197 = vector.extract_strided_slice %196 {offsets = [0, 0], sizes = [7, 32], strides = [1, 1]} : vector<7x128xf32> to vector<7x32xf32>
    %198 = arith.negf %197 : vector<7x32xf32>
    %199 = math.exp %198 : vector<7x32xf32>
    %cst_44 = arith.constant 1.000000e+00 : f32
    %200 = vector.broadcast %cst_44 : f32 to vector<7x32xf32>
    %201 = arith.addf %200, %199 : vector<7x32xf32>
    %202 = arith.divf %200, %201 : vector<7x32xf32>
    %203 = vector.extract_strided_slice %196 {offsets = [0, 32], sizes = [7, 32], strides = [1, 1]} : vector<7x128xf32> to vector<7x32xf32>
    %204 = arith.negf %203 : vector<7x32xf32>
    %205 = math.exp %204 : vector<7x32xf32>
    %cst_45 = arith.constant 1.000000e+00 : f32
    %206 = vector.broadcast %cst_45 : f32 to vector<7x32xf32>
    %207 = arith.addf %206, %205 : vector<7x32xf32>
    %208 = arith.divf %206, %207 : vector<7x32xf32>
    %209 = vector.extract_strided_slice %196 {offsets = [0, 64], sizes = [7, 32], strides = [1, 1]} : vector<7x128xf32> to vector<7x32xf32>
    %210 = math.tanh %209 : vector<7x32xf32>
    %211 = vector.extract_strided_slice %196 {offsets = [0, 96], sizes = [7, 32], strides = [1, 1]} : vector<7x128xf32> to vector<7x32xf32>
    %212 = arith.negf %211 : vector<7x32xf32>
    %213 = math.exp %212 : vector<7x32xf32>
    %cst_46 = arith.constant 1.000000e+00 : f32
    %214 = vector.broadcast %cst_46 : f32 to vector<7x32xf32>
    %215 = arith.addf %214, %213 : vector<7x32xf32>
    %216 = arith.divf %214, %215 : vector<7x32xf32>
    %217 = arith.mulf %208, %190 : vector<7x32xf32>
    %218 = arith.mulf %202, %210 : vector<7x32xf32>
    %219 = arith.addf %217, %218 : vector<7x32xf32>
    %220 = math.tanh %219 : vector<7x32xf32>
    %221 = arith.mulf %216, %220 : vector<7x32xf32>
    %c42 = arith.constant 42 : index
    %c0_47 = arith.constant 0 : index
    %222 = vector.load %arg12[%c42, %c0_47] : memref<56x32xf32, #tpu.memory_space<vmem>>, vector<7x32xf32>
    tpu.vector_store %arg12[%c42, %c0_47], %221 {strides = array<i32>} : memref<56x32xf32, #tpu.memory_space<vmem>>, vector<7x32xf32>,
    %223 = vector.extract_strided_slice %17 {offsets = [49, 0], sizes = [7, 128], strides = [1, 1]} : vector<56x128xf32> to vector<7x128xf32>
    %cst_48 = arith.constant dense<0.000000e+00> : vector<7x128xf32>
    %224 = tpu.matmul %221, %12, %cst_48 {dimension_numbers = #tpu.dot_dimension_numbers<[1], [0], [0], [1], [0, 0, 1, 1], [], []>} : vector<7x32xf32>, vector<32x128xf32>, vector<7x128xf32> -> vector<7x128xf32>
    %225 = arith.addf %223, %224 : vector<7x128xf32>
    %226 = vector.extract_strided_slice %225 {offsets = [0, 0], sizes = [7, 32], strides = [1, 1]} : vector<7x128xf32> to vector<7x32xf32>
    %227 = arith.negf %226 : vector<7x32xf32>
    %228 = math.exp %227 : vector<7x32xf32>
    %cst_49 = arith.constant 1.000000e+00 : f32
    %229 = vector.broadcast %cst_49 : f32 to vector<7x32xf32>
    %230 = arith.addf %229, %228 : vector<7x32xf32>
    %231 = arith.divf %229, %230 : vector<7x32xf32>
    %232 = vector.extract_strided_slice %225 {offsets = [0, 32], sizes = [7, 32], strides = [1, 1]} : vector<7x128xf32> to vector<7x32xf32>
    %233 = arith.negf %232 : vector<7x32xf32>
    %234 = math.exp %233 : vector<7x32xf32>
    %cst_50 = arith.constant 1.000000e+00 : f32
    %235 = vector.broadcast %cst_50 : f32 to vector<7x32xf32>
    %236 = arith.addf %235, %234 : vector<7x32xf32>
    %237 = arith.divf %235, %236 : vector<7x32xf32>
    %238 = vector.extract_strided_slice %225 {offsets = [0, 64], sizes = [7, 32], strides = [1, 1]} : vector<7x128xf32> to vector<7x32xf32>
    %239 = math.tanh %238 : vector<7x32xf32>
    %240 = vector.extract_strided_slice %225 {offsets = [0, 96], sizes = [7, 32], strides = [1, 1]} : vector<7x128xf32> to vector<7x32xf32>
    %241 = arith.negf %240 : vector<7x32xf32>
    %242 = math.exp %241 : vector<7x32xf32>
    %cst_51 = arith.constant 1.000000e+00 : f32
    %243 = vector.broadcast %cst_51 : f32 to vector<7x32xf32>
    %244 = arith.addf %243, %242 : vector<7x32xf32>
    %245 = arith.divf %243, %244 : vector<7x32xf32>
    %246 = arith.mulf %237, %219 : vector<7x32xf32>
    %247 = arith.mulf %231, %239 : vector<7x32xf32>
    %248 = arith.addf %246, %247 : vector<7x32xf32>
    %249 = math.tanh %248 : vector<7x32xf32>
    %250 = arith.mulf %245, %249 : vector<7x32xf32>
    %c49 = arith.constant 49 : index
    %c0_52 = arith.constant 0 : index
    %251 = vector.load %arg12[%c49, %c0_52] : memref<56x32xf32, #tpu.memory_space<vmem>>, vector<7x32xf32>
    tpu.vector_store %arg12[%c49, %c0_52], %250 {strides = array<i32>} : memref<56x32xf32, #tpu.memory_space<vmem>>, vector<7x32xf32>,
    %c0_53 = arith.constant 0 : index
    %c0_54 = arith.constant 0 : index
    %252 = vector.load %arg12[%c0_53, %c0_54] : memref<56x32xf32, #tpu.memory_space<vmem>>, vector<56x32xf32>
    %c0_55 = arith.constant 0 : index
    %c0_56 = arith.constant 0 : index
    %253 = vector.load %arg7[%c0_55, %c0_56] : memref<32x128xf32, #tpu.memory_space<vmem>>, vector<32x128xf32>
    %c0_57 = arith.constant 0 : index
    %c0_58 = arith.constant 0 : index
    %254 = vector.load %arg6[%c0_57, %c0_58] : memref<32x128xf32, #tpu.memory_space<vmem>>, vector<32x128xf32>
    %cst_59 = arith.constant dense<0.000000e+00> : vector<56x128xf32>
    %255 = tpu.matmul %252, %254, %cst_59 {dimension_numbers = #tpu.dot_dimension_numbers<[1], [0], [0], [1], [0, 0, 1, 1], [], []>} : vector<56x32xf32>, vector<32x128xf32>, vector<56x128xf32> -> vector<56x128xf32>
    %c0_60 = arith.constant 0 : index
    %c0_61 = arith.constant 0 : index
    %256 = vector.load %arg8[%c0_60, %c0_61] : memref<1x128xf32, #tpu.memory_space<vmem>>, vector<1x128xf32>
    %257 = vector.broadcast %256 : vector<1x128xf32> to vector<56x128xf32>
    %258 = arith.addf %255, %257 : vector<56x128xf32>
    %cst_62 = arith.constant 0.000000e+00 : f32
    %259 = vector.broadcast %cst_62 : f32 to vector<7x32xf32>
    %cst_63 = arith.constant 0.000000e+00 : f32
    %260 = vector.broadcast %cst_63 : f32 to vector<7x32xf32>
    %261 = vector.extract_strided_slice %258 {offsets = [0, 0], sizes = [7, 128], strides = [1, 1]} : vector<56x128xf32> to vector<7x128xf32>
    %cst_64 = arith.constant dense<0.000000e+00> : vector<7x128xf32>
    %262 = tpu.matmul %259, %253, %cst_64 {dimension_numbers = #tpu.dot_dimension_numbers<[1], [0], [0], [1], [0, 0, 1, 1], [], []>} : vector<7x32xf32>, vector<32x128xf32>, vector<7x128xf32> -> vector<7x128xf32>
    %263 = arith.addf %261, %262 : vector<7x128xf32>
    %264 = vector.extract_strided_slice %263 {offsets = [0, 0], sizes = [7, 32], strides = [1, 1]} : vector<7x128xf32> to vector<7x32xf32>
    %265 = arith.negf %264 : vector<7x32xf32>
    %266 = math.exp %265 : vector<7x32xf32>
    %cst_65 = arith.constant 1.000000e+00 : f32
    %267 = vector.broadcast %cst_65 : f32 to vector<7x32xf32>
    %268 = arith.addf %267, %266 : vector<7x32xf32>
    %269 = arith.divf %267, %268 : vector<7x32xf32>
    %270 = vector.extract_strided_slice %263 {offsets = [0, 32], sizes = [7, 32], strides = [1, 1]} : vector<7x128xf32> to vector<7x32xf32>
    %271 = arith.negf %270 : vector<7x32xf32>
    %272 = math.exp %271 : vector<7x32xf32>
    %cst_66 = arith.constant 1.000000e+00 : f32
    %273 = vector.broadcast %cst_66 : f32 to vector<7x32xf32>
    %274 = arith.addf %273, %272 : vector<7x32xf32>
    %275 = arith.divf %273, %274 : vector<7x32xf32>
    %276 = vector.extract_strided_slice %263 {offsets = [0, 64], sizes = [7, 32], strides = [1, 1]} : vector<7x128xf32> to vector<7x32xf32>
    %277 = math.tanh %276 : vector<7x32xf32>
    %278 = vector.extract_strided_slice %263 {offsets = [0, 96], sizes = [7, 32], strides = [1, 1]} : vector<7x128xf32> to vector<7x32xf32>
    %279 = arith.negf %278 : vector<7x32xf32>
    %280 = math.exp %279 : vector<7x32xf32>
    %cst_67 = arith.constant 1.000000e+00 : f32
    %281 = vector.broadcast %cst_67 : f32 to vector<7x32xf32>
    %282 = arith.addf %281, %280 : vector<7x32xf32>
    %283 = arith.divf %281, %282 : vector<7x32xf32>
    %284 = arith.mulf %275, %260 : vector<7x32xf32>
    %285 = arith.mulf %269, %277 : vector<7x32xf32>
    %286 = arith.addf %284, %285 : vector<7x32xf32>
    %287 = math.tanh %286 : vector<7x32xf32>
    %288 = arith.mulf %283, %287 : vector<7x32xf32>
    %289 = vector.extract_strided_slice %258 {offsets = [7, 0], sizes = [7, 128], strides = [1, 1]} : vector<56x128xf32> to vector<7x128xf32>
    %cst_68 = arith.constant dense<0.000000e+00> : vector<7x128xf32>
    %290 = tpu.matmul %288, %253, %cst_68 {dimension_numbers = #tpu.dot_dimension_numbers<[1], [0], [0], [1], [0, 0, 1, 1], [], []>} : vector<7x32xf32>, vector<32x128xf32>, vector<7x128xf32> -> vector<7x128xf32>
    %291 = arith.addf %289, %290 : vector<7x128xf32>
    %292 = vector.extract_strided_slice %291 {offsets = [0, 0], sizes = [7, 32], strides = [1, 1]} : vector<7x128xf32> to vector<7x32xf32>
    %293 = arith.negf %292 : vector<7x32xf32>
    %294 = math.exp %293 : vector<7x32xf32>
    %cst_69 = arith.constant 1.000000e+00 : f32
    %295 = vector.broadcast %cst_69 : f32 to vector<7x32xf32>
    %296 = arith.addf %295, %294 : vector<7x32xf32>
    %297 = arith.divf %295, %296 : vector<7x32xf32>
    %298 = vector.extract_strided_slice %291 {offsets = [0, 32], sizes = [7, 32], strides = [1, 1]} : vector<7x128xf32> to vector<7x32xf32>
    %299 = arith.negf %298 : vector<7x32xf32>
    %300 = math.exp %299 : vector<7x32xf32>
    %cst_70 = arith.constant 1.000000e+00 : f32
    %301 = vector.broadcast %cst_70 : f32 to vector<7x32xf32>
    %302 = arith.addf %301, %300 : vector<7x32xf32>
    %303 = arith.divf %301, %302 : vector<7x32xf32>
    %304 = vector.extract_strided_slice %291 {offsets = [0, 64], sizes = [7, 32], strides = [1, 1]} : vector<7x128xf32> to vector<7x32xf32>
    %305 = math.tanh %304 : vector<7x32xf32>
    %306 = vector.extract_strided_slice %291 {offsets = [0, 96], sizes = [7, 32], strides = [1, 1]} : vector<7x128xf32> to vector<7x32xf32>
    %307 = arith.negf %306 : vector<7x32xf32>
    %308 = math.exp %307 : vector<7x32xf32>
    %cst_71 = arith.constant 1.000000e+00 : f32
    %309 = vector.broadcast %cst_71 : f32 to vector<7x32xf32>
    %310 = arith.addf %309, %308 : vector<7x32xf32>
    %311 = arith.divf %309, %310 : vector<7x32xf32>
    %312 = arith.mulf %303, %286 : vector<7x32xf32>
    %313 = arith.mulf %297, %305 : vector<7x32xf32>
    %314 = arith.addf %312, %313 : vector<7x32xf32>
    %315 = math.tanh %314 : vector<7x32xf32>
    %316 = arith.mulf %311, %315 : vector<7x32xf32>
    %317 = vector.extract_strided_slice %258 {offsets = [14, 0], sizes = [7, 128], strides = [1, 1]} : vector<56x128xf32> to vector<7x128xf32>
    %cst_72 = arith.constant dense<0.000000e+00> : vector<7x128xf32>
    %318 = tpu.matmul %316, %253, %cst_72 {dimension_numbers = #tpu.dot_dimension_numbers<[1], [0], [0], [1], [0, 0, 1, 1], [], []>} : vector<7x32xf32>, vector<32x128xf32>, vector<7x128xf32> -> vector<7x128xf32>
    %319 = arith.addf %317, %318 : vector<7x128xf32>
    %320 = vector.extract_strided_slice %319 {offsets = [0, 0], sizes = [7, 32], strides = [1, 1]} : vector<7x128xf32> to vector<7x32xf32>
    %321 = arith.negf %320 : vector<7x32xf32>
    %322 = math.exp %321 : vector<7x32xf32>
    %cst_73 = arith.constant 1.000000e+00 : f32
    %323 = vector.broadcast %cst_73 : f32 to vector<7x32xf32>
    %324 = arith.addf %323, %322 : vector<7x32xf32>
    %325 = arith.divf %323, %324 : vector<7x32xf32>
    %326 = vector.extract_strided_slice %319 {offsets = [0, 32], sizes = [7, 32], strides = [1, 1]} : vector<7x128xf32> to vector<7x32xf32>
    %327 = arith.negf %326 : vector<7x32xf32>
    %328 = math.exp %327 : vector<7x32xf32>
    %cst_74 = arith.constant 1.000000e+00 : f32
    %329 = vector.broadcast %cst_74 : f32 to vector<7x32xf32>
    %330 = arith.addf %329, %328 : vector<7x32xf32>
    %331 = arith.divf %329, %330 : vector<7x32xf32>
    %332 = vector.extract_strided_slice %319 {offsets = [0, 64], sizes = [7, 32], strides = [1, 1]} : vector<7x128xf32> to vector<7x32xf32>
    %333 = math.tanh %332 : vector<7x32xf32>
    %334 = vector.extract_strided_slice %319 {offsets = [0, 96], sizes = [7, 32], strides = [1, 1]} : vector<7x128xf32> to vector<7x32xf32>
    %335 = arith.negf %334 : vector<7x32xf32>
    %336 = math.exp %335 : vector<7x32xf32>
    %cst_75 = arith.constant 1.000000e+00 : f32
    %337 = vector.broadcast %cst_75 : f32 to vector<7x32xf32>
    %338 = arith.addf %337, %336 : vector<7x32xf32>
    %339 = arith.divf %337, %338 : vector<7x32xf32>
    %340 = arith.mulf %331, %314 : vector<7x32xf32>
    %341 = arith.mulf %325, %333 : vector<7x32xf32>
    %342 = arith.addf %340, %341 : vector<7x32xf32>
    %343 = math.tanh %342 : vector<7x32xf32>
    %344 = arith.mulf %339, %343 : vector<7x32xf32>
    %345 = vector.extract_strided_slice %258 {offsets = [21, 0], sizes = [7, 128], strides = [1, 1]} : vector<56x128xf32> to vector<7x128xf32>
    %cst_76 = arith.constant dense<0.000000e+00> : vector<7x128xf32>
    %346 = tpu.matmul %344, %253, %cst_76 {dimension_numbers = #tpu.dot_dimension_numbers<[1], [0], [0], [1], [0, 0, 1, 1], [], []>} : vector<7x32xf32>, vector<32x128xf32>, vector<7x128xf32> -> vector<7x128xf32>
    %347 = arith.addf %345, %346 : vector<7x128xf32>
    %348 = vector.extract_strided_slice %347 {offsets = [0, 0], sizes = [7, 32], strides = [1, 1]} : vector<7x128xf32> to vector<7x32xf32>
    %349 = arith.negf %348 : vector<7x32xf32>
    %350 = math.exp %349 : vector<7x32xf32>
    %cst_77 = arith.constant 1.000000e+00 : f32
    %351 = vector.broadcast %cst_77 : f32 to vector<7x32xf32>
    %352 = arith.addf %351, %350 : vector<7x32xf32>
    %353 = arith.divf %351, %352 : vector<7x32xf32>
    %354 = vector.extract_strided_slice %347 {offsets = [0, 32], sizes = [7, 32], strides = [1, 1]} : vector<7x128xf32> to vector<7x32xf32>
    %355 = arith.negf %354 : vector<7x32xf32>
    %356 = math.exp %355 : vector<7x32xf32>
    %cst_78 = arith.constant 1.000000e+00 : f32
    %357 = vector.broadcast %cst_78 : f32 to vector<7x32xf32>
    %358 = arith.addf %357, %356 : vector<7x32xf32>
    %359 = arith.divf %357, %358 : vector<7x32xf32>
    %360 = vector.extract_strided_slice %347 {offsets = [0, 64], sizes = [7, 32], strides = [1, 1]} : vector<7x128xf32> to vector<7x32xf32>
    %361 = math.tanh %360 : vector<7x32xf32>
    %362 = vector.extract_strided_slice %347 {offsets = [0, 96], sizes = [7, 32], strides = [1, 1]} : vector<7x128xf32> to vector<7x32xf32>
    %363 = arith.negf %362 : vector<7x32xf32>
    %364 = math.exp %363 : vector<7x32xf32>
    %cst_79 = arith.constant 1.000000e+00 : f32
    %365 = vector.broadcast %cst_79 : f32 to vector<7x32xf32>
    %366 = arith.addf %365, %364 : vector<7x32xf32>
    %367 = arith.divf %365, %366 : vector<7x32xf32>
    %368 = arith.mulf %359, %342 : vector<7x32xf32>
    %369 = arith.mulf %353, %361 : vector<7x32xf32>
    %370 = arith.addf %368, %369 : vector<7x32xf32>
    %371 = math.tanh %370 : vector<7x32xf32>
    %372 = arith.mulf %367, %371 : vector<7x32xf32>
    %373 = vector.extract_strided_slice %258 {offsets = [28, 0], sizes = [7, 128], strides = [1, 1]} : vector<56x128xf32> to vector<7x128xf32>
    %cst_80 = arith.constant dense<0.000000e+00> : vector<7x128xf32>
    %374 = tpu.matmul %372, %253, %cst_80 {dimension_numbers = #tpu.dot_dimension_numbers<[1], [0], [0], [1], [0, 0, 1, 1], [], []>} : vector<7x32xf32>, vector<32x128xf32>, vector<7x128xf32> -> vector<7x128xf32>
    %375 = arith.addf %373, %374 : vector<7x128xf32>
    %376 = vector.extract_strided_slice %375 {offsets = [0, 0], sizes = [7, 32], strides = [1, 1]} : vector<7x128xf32> to vector<7x32xf32>
    %377 = arith.negf %376 : vector<7x32xf32>
    %378 = math.exp %377 : vector<7x32xf32>
    %cst_81 = arith.constant 1.000000e+00 : f32
    %379 = vector.broadcast %cst_81 : f32 to vector<7x32xf32>
    %380 = arith.addf %379, %378 : vector<7x32xf32>
    %381 = arith.divf %379, %380 : vector<7x32xf32>
    %382 = vector.extract_strided_slice %375 {offsets = [0, 32], sizes = [7, 32], strides = [1, 1]} : vector<7x128xf32> to vector<7x32xf32>
    %383 = arith.negf %382 : vector<7x32xf32>
    %384 = math.exp %383 : vector<7x32xf32>
    %cst_82 = arith.constant 1.000000e+00 : f32
    %385 = vector.broadcast %cst_82 : f32 to vector<7x32xf32>
    %386 = arith.addf %385, %384 : vector<7x32xf32>
    %387 = arith.divf %385, %386 : vector<7x32xf32>
    %388 = vector.extract_strided_slice %375 {offsets = [0, 64], sizes = [7, 32], strides = [1, 1]} : vector<7x128xf32> to vector<7x32xf32>
    %389 = math.tanh %388 : vector<7x32xf32>
    %390 = vector.extract_strided_slice %375 {offsets = [0, 96], sizes = [7, 32], strides = [1, 1]} : vector<7x128xf32> to vector<7x32xf32>
    %391 = arith.negf %390 : vector<7x32xf32>
    %392 = math.exp %391 : vector<7x32xf32>
    %cst_83 = arith.constant 1.000000e+00 : f32
    %393 = vector.broadcast %cst_83 : f32 to vector<7x32xf32>
    %394 = arith.addf %393, %392 : vector<7x32xf32>
    %395 = arith.divf %393, %394 : vector<7x32xf32>
    %396 = arith.mulf %387, %370 : vector<7x32xf32>
    %397 = arith.mulf %381, %389 : vector<7x32xf32>
    %398 = arith.addf %396, %397 : vector<7x32xf32>
    %399 = math.tanh %398 : vector<7x32xf32>
    %400 = arith.mulf %395, %399 : vector<7x32xf32>
    %401 = vector.extract_strided_slice %258 {offsets = [35, 0], sizes = [7, 128], strides = [1, 1]} : vector<56x128xf32> to vector<7x128xf32>
    %cst_84 = arith.constant dense<0.000000e+00> : vector<7x128xf32>
    %402 = tpu.matmul %400, %253, %cst_84 {dimension_numbers = #tpu.dot_dimension_numbers<[1], [0], [0], [1], [0, 0, 1, 1], [], []>} : vector<7x32xf32>, vector<32x128xf32>, vector<7x128xf32> -> vector<7x128xf32>
    %403 = arith.addf %401, %402 : vector<7x128xf32>
    %404 = vector.extract_strided_slice %403 {offsets = [0, 0], sizes = [7, 32], strides = [1, 1]} : vector<7x128xf32> to vector<7x32xf32>
    %405 = arith.negf %404 : vector<7x32xf32>
    %406 = math.exp %405 : vector<7x32xf32>
    %cst_85 = arith.constant 1.000000e+00 : f32
    %407 = vector.broadcast %cst_85 : f32 to vector<7x32xf32>
    %408 = arith.addf %407, %406 : vector<7x32xf32>
    %409 = arith.divf %407, %408 : vector<7x32xf32>
    %410 = vector.extract_strided_slice %403 {offsets = [0, 32], sizes = [7, 32], strides = [1, 1]} : vector<7x128xf32> to vector<7x32xf32>
    %411 = arith.negf %410 : vector<7x32xf32>
    %412 = math.exp %411 : vector<7x32xf32>
    %cst_86 = arith.constant 1.000000e+00 : f32
    %413 = vector.broadcast %cst_86 : f32 to vector<7x32xf32>
    %414 = arith.addf %413, %412 : vector<7x32xf32>
    %415 = arith.divf %413, %414 : vector<7x32xf32>
    %416 = vector.extract_strided_slice %403 {offsets = [0, 64], sizes = [7, 32], strides = [1, 1]} : vector<7x128xf32> to vector<7x32xf32>
    %417 = math.tanh %416 : vector<7x32xf32>
    %418 = vector.extract_strided_slice %403 {offsets = [0, 96], sizes = [7, 32], strides = [1, 1]} : vector<7x128xf32> to vector<7x32xf32>
    %419 = arith.negf %418 : vector<7x32xf32>
    %420 = math.exp %419 : vector<7x32xf32>
    %cst_87 = arith.constant 1.000000e+00 : f32
    %421 = vector.broadcast %cst_87 : f32 to vector<7x32xf32>
    %422 = arith.addf %421, %420 : vector<7x32xf32>
    %423 = arith.divf %421, %422 : vector<7x32xf32>
    %424 = arith.mulf %415, %398 : vector<7x32xf32>
    %425 = arith.mulf %409, %417 : vector<7x32xf32>
    %426 = arith.addf %424, %425 : vector<7x32xf32>
    %427 = math.tanh %426 : vector<7x32xf32>
    %428 = arith.mulf %423, %427 : vector<7x32xf32>
    %429 = vector.extract_strided_slice %258 {offsets = [42, 0], sizes = [7, 128], strides = [1, 1]} : vector<56x128xf32> to vector<7x128xf32>
    %cst_88 = arith.constant dense<0.000000e+00> : vector<7x128xf32>
    %430 = tpu.matmul %428, %253, %cst_88 {dimension_numbers = #tpu.dot_dimension_numbers<[1], [0], [0], [1], [0, 0, 1, 1], [], []>} : vector<7x32xf32>, vector<32x128xf32>, vector<7x128xf32> -> vector<7x128xf32>
    %431 = arith.addf %429, %430 : vector<7x128xf32>
    %432 = vector.extract_strided_slice %431 {offsets = [0, 0], sizes = [7, 32], strides = [1, 1]} : vector<7x128xf32> to vector<7x32xf32>
    %433 = arith.negf %432 : vector<7x32xf32>
    %434 = math.exp %433 : vector<7x32xf32>
    %cst_89 = arith.constant 1.000000e+00 : f32
    %435 = vector.broadcast %cst_89 : f32 to vector<7x32xf32>
    %436 = arith.addf %435, %434 : vector<7x32xf32>
    %437 = arith.divf %435, %436 : vector<7x32xf32>
    %438 = vector.extract_strided_slice %431 {offsets = [0, 32], sizes = [7, 32], strides = [1, 1]} : vector<7x128xf32> to vector<7x32xf32>
    %439 = arith.negf %438 : vector<7x32xf32>
    %440 = math.exp %439 : vector<7x32xf32>
    %cst_90 = arith.constant 1.000000e+00 : f32
    %441 = vector.broadcast %cst_90 : f32 to vector<7x32xf32>
    %442 = arith.addf %441, %440 : vector<7x32xf32>
    %443 = arith.divf %441, %442 : vector<7x32xf32>
    %444 = vector.extract_strided_slice %431 {offsets = [0, 64], sizes = [7, 32], strides = [1, 1]} : vector<7x128xf32> to vector<7x32xf32>
    %445 = math.tanh %444 : vector<7x32xf32>
    %446 = vector.extract_strided_slice %431 {offsets = [0, 96], sizes = [7, 32], strides = [1, 1]} : vector<7x128xf32> to vector<7x32xf32>
    %447 = arith.negf %446 : vector<7x32xf32>
    %448 = math.exp %447 : vector<7x32xf32>
    %cst_91 = arith.constant 1.000000e+00 : f32
    %449 = vector.broadcast %cst_91 : f32 to vector<7x32xf32>
    %450 = arith.addf %449, %448 : vector<7x32xf32>
    %451 = arith.divf %449, %450 : vector<7x32xf32>
    %452 = arith.mulf %443, %426 : vector<7x32xf32>
    %453 = arith.mulf %437, %445 : vector<7x32xf32>
    %454 = arith.addf %452, %453 : vector<7x32xf32>
    %455 = math.tanh %454 : vector<7x32xf32>
    %456 = arith.mulf %451, %455 : vector<7x32xf32>
    %c42_92 = arith.constant 42 : index
    %c0_93 = arith.constant 0 : index
    %457 = vector.load %arg12[%c42_92, %c0_93] : memref<56x32xf32, #tpu.memory_space<vmem>>, vector<7x32xf32>
    tpu.vector_store %arg12[%c42_92, %c0_93], %456 {strides = array<i32>} : memref<56x32xf32, #tpu.memory_space<vmem>>, vector<7x32xf32>,
    %458 = vector.extract_strided_slice %258 {offsets = [49, 0], sizes = [7, 128], strides = [1, 1]} : vector<56x128xf32> to vector<7x128xf32>
    %cst_94 = arith.constant dense<0.000000e+00> : vector<7x128xf32>
    %459 = tpu.matmul %456, %253, %cst_94 {dimension_numbers = #tpu.dot_dimension_numbers<[1], [0], [0], [1], [0, 0, 1, 1], [], []>} : vector<7x32xf32>, vector<32x128xf32>, vector<7x128xf32> -> vector<7x128xf32>
    %460 = arith.addf %458, %459 : vector<7x128xf32>
    %461 = vector.extract_strided_slice %460 {offsets = [0, 0], sizes = [7, 32], strides = [1, 1]} : vector<7x128xf32> to vector<7x32xf32>
    %462 = arith.negf %461 : vector<7x32xf32>
    %463 = math.exp %462 : vector<7x32xf32>
    %cst_95 = arith.constant 1.000000e+00 : f32
    %464 = vector.broadcast %cst_95 : f32 to vector<7x32xf32>
    %465 = arith.addf %464, %463 : vector<7x32xf32>
    %466 = arith.divf %464, %465 : vector<7x32xf32>
    %467 = vector.extract_strided_slice %460 {offsets = [0, 32], sizes = [7, 32], strides = [1, 1]} : vector<7x128xf32> to vector<7x32xf32>
    %468 = arith.negf %467 : vector<7x32xf32>
    %469 = math.exp %468 : vector<7x32xf32>
    %cst_96 = arith.constant 1.000000e+00 : f32
    %470 = vector.broadcast %cst_96 : f32 to vector<7x32xf32>
    %471 = arith.addf %470, %469 : vector<7x32xf32>
    %472 = arith.divf %470, %471 : vector<7x32xf32>
    %473 = vector.extract_strided_slice %460 {offsets = [0, 64], sizes = [7, 32], strides = [1, 1]} : vector<7x128xf32> to vector<7x32xf32>
    %474 = math.tanh %473 : vector<7x32xf32>
    %475 = vector.extract_strided_slice %460 {offsets = [0, 96], sizes = [7, 32], strides = [1, 1]} : vector<7x128xf32> to vector<7x32xf32>
    %476 = arith.negf %475 : vector<7x32xf32>
    %477 = math.exp %476 : vector<7x32xf32>
    %cst_97 = arith.constant 1.000000e+00 : f32
    %478 = vector.broadcast %cst_97 : f32 to vector<7x32xf32>
    %479 = arith.addf %478, %477 : vector<7x32xf32>
    %480 = arith.divf %478, %479 : vector<7x32xf32>
    %481 = arith.mulf %472, %454 : vector<7x32xf32>
    %482 = arith.mulf %466, %474 : vector<7x32xf32>
    %483 = arith.addf %481, %482 : vector<7x32xf32>
    %484 = math.tanh %483 : vector<7x32xf32>
    %485 = arith.mulf %480, %484 : vector<7x32xf32>
    %c49_98 = arith.constant 49 : index
    %c0_99 = arith.constant 0 : index
    %486 = vector.load %arg12[%c49_98, %c0_99] : memref<56x32xf32, #tpu.memory_space<vmem>>, vector<7x32xf32>
    tpu.vector_store %arg12[%c49_98, %c0_99], %485 {strides = array<i32>} : memref<56x32xf32, #tpu.memory_space<vmem>>, vector<7x32xf32>,
    %c48 = arith.constant 48 : index
    %c0_100 = arith.constant 0 : index
    %487 = vector.load %arg12[%c48, %c0_100] : memref<56x32xf32, #tpu.memory_space<vmem>>, vector<8x32xf32>
    %c0_101 = arith.constant 0 : index
    %c0_102 = arith.constant 0 : index
    %488 = vector.load %arg9[%c0_101, %c0_102] : memref<32x1xf32, #tpu.memory_space<vmem>>, vector<32x1xf32>
    %cst_103 = arith.constant dense<0.000000e+00> : vector<8x1xf32>
    %489 = tpu.matmul %487, %488, %cst_103 {dimension_numbers = #tpu.dot_dimension_numbers<[1], [0], [0], [1], [0, 0, 1, 1], [], []>} : vector<8x32xf32>, vector<32x1xf32>, vector<8x1xf32> -> vector<8x1xf32>
    %c0_104 = arith.constant 0 : index
    %c0_105 = arith.constant 0 : index
    %490 = vector.load %arg10[%c0_104, %c0_105] : memref<1x1xf32, #tpu.memory_space<vmem>>, vector<1x1xf32>
    %491 = vector.broadcast %490 : vector<1x1xf32> to vector<8x1xf32>
    %492 = arith.addf %489, %491 : vector<8x1xf32>
    %c0_106 = arith.constant 0 : index
    %c0_107 = arith.constant 0 : index
    %493 = vector.load %arg11[%c0_106, %c0_107] : memref<8x1xf32, #tpu.memory_space<vmem>>, vector<8x1xf32>
    tpu.vector_store %arg11[%c0_106, %c0_107], %492 {strides = array<i32>} : memref<8x1xf32, #tpu.memory_space<vmem>>, vector<8x1xf32>,
    return
  }
}

</mosaic_0001>

<bundles_post_ra>
// kernel: forward.1
= control target key start
LH: loop header
LB: loop body
LE: loop exit
PB: predicated region body
PF: predicated region fallthrough
CT: control target
= control target key end

     0   :  { %s3044_s0 = inlined_call_operand.vmem [shape: f32[3], index: 0, kind: input, shape index: {}]   ;;  %s3045_s1 = inlined_call_operand.vmem [shape: f32[56,4], index: 1, kind: input, shape index: {}]   ;;  %s3046_s2 = inlined_call_operand.vmem [shape: f32[56,4], index: 2, kind: input, shape index: {}]   ;;  %s3047_s3 = inlined_call_operand.vmem [shape: f32[4,128], index: 3, kind: input, shape index: {}]   ;;  %s3048_s4 = inlined_call_operand.vmem [shape: f32[32,128], index: 4, kind: input, shape index: {}]   ;;  %s3049_s5 = inlined_call_operand.vmem [shape: f32[1,128], index: 5, kind: input, shape index: {}]   ;;  %s3050_s6 = inlined_call_operand.vmem [shape: f32[32,128], index: 6, kind: input, shape index: {}]   ;;  %s3051_s7 = inlined_call_operand.vmem [shape: f32[32,128], index: 7, kind: input, shape index: {}]   ;;  %s3052_s8 = inlined_call_operand.vmem [shape: f32[1,128], index: 8, kind: input, shape index: {}]   ;;  %s3053_s9 = inlined_call_operand.vmem [shape: f32[32,1], index: 9, kind: input, shape index: {}]   ;;  %s3054_s10 = inlined_call_operand.<no memory space> [shape: f32[1,1], index: 10, kind: input, shape index: {}]   ;;  %s3055_s11 = inlined_call_operand.vmem [shape: f32[8,1], index: 11, kind: output, shape index: {}]  }
   0x1   :  { %v16_v0 = vstv %s3054_s10 }
   0x2   :  { %17 = vst [vmem:[#allocation3] sm:$0x1] %v16_v0 }
   0x3   :  { %18 = vsyncpa [#allocation5], 0  ;;  %s24_s21 = sshll.u32 %s3044_s0, 4  ;;  %s2322_s22 = smov [#allocation4]   ;;  %s25_s21 = int_to_ptr.vmem [resolvable:$true] %s24_s21 }
   0x4   :  { %27 = dma.vmem_to_smem %s25_s21, 16, %s2322_s22, [#allocation5]  }
   0x5   :  { %2320 = dma.done.wait [#allocation5], 16  }
   0x6   :  { %2321 = vsyncadd [#allocation5], 4294967280 }
   0x7   :  { %52 = sfence }
   0x8   :  { %v2395_v1 = vld [vmem:[%s3048_s4 + $0x18] sm:$0xff]  ;;  %v2400_v2 = vld [vmem:[%s3048_s4 + $0x10] sm:$0xff]  ;;  %v105_v3 = vld [vmem:[%s3047_s3] sm:$0xf]  ;;  %vm132_vm0 = vcmask 1043456   ;;  %s53_s0 = sld [smem:[#allocation4]] }
   0x9   :  { %190 = vmatpush.msra.mxu1 %v2395_v1  ;;  %2017 = vmatpush.msk.msra.mxu0 %vm132_vm0, %v105_v3  ;;  %v2410_v4 = vld [vmem:[%s3048_s4 + $0x8] sm:$0xff]  ;;  %s2015_s30 = sld [smem:[#allocation4 + $0x1]]  ;;  %v2418_v5 = vld [vmem:[%s3048_s4] sm:$0xff]  ;;  %v2323_v11 = vmov 0.0   ;;  %vm110_vm1 = vcmask 31744   ;;  %s2324_s19 = smov 64  }
   0xa   :  { %256 = vmatpush.msra.mxu2 %v2395_v1  ;;  %756 = vmatpush.msra.mxu3 %v2395_v1  ;;  %s2016_s12 = sld [smem:[#allocation4 + $0x2]]  ;;  %v56_v6 = vld [vmem:[%s3045_s1] sm:$0xff]  ;;  %s2325_s20 = smov 32   ;;  %v57_v43 = vld [vmem:[%s3045_s1 + $0x8] sm:$0xff]  ;;  %vm240_vm6 = vcmask 260096   ;;  %vm174_vm7 = vcmask 261120  }
   0xb   :  { %191 = vmatpush.msra.mxu1 %v2400_v2  ;;  %v71_v7 = vld [vmem:[%s3046_s2] sm:$0xff]  ;;  %v72_v44 = vld [vmem:[%s3046_s2 + $0x8] sm:$0xff] }
   0xc   :  { %257 = vmatpush.msra.mxu2 %v2400_v2  ;;  %757 = vmatpush.msra.mxu3 %v2400_v2  ;;  %v2460_v16 = vld [vmem:[%s3049_s5] ss:$0 sm:$0xff] }
   0xd   :  { %192 = vmatpush.msra.mxu1 %v2410_v4 }
   0xe   :  { %258 = vmatpush.msra.mxu2 %v2410_v4  ;;  %758 = vmatpush.msra.mxu3 %v2410_v4  ;;  %v2431_v8 = vstv %s53_s0 }
   0xf   :  { %193 = vmatpush.msra.mxu1 %v2418_v5  ;;  %v64_v9 = vmul.f32 %v2431_v8, %v56_v6  ;;  %v2435_v10 = vstv %s2015_s30  ;;  %v65_v45 = vmul.f32 %v2431_v8, %v57_v43 }
  0x10   :  { %194 = vmatmul.f32.vlgmr.msra.gmra.mxu1 %v2323_v11  ;;  %259 = vmatpush.msra.mxu2 %v2418_v5  ;;  %v79_v12 = vmul.f32 %v2435_v10, %v71_v7  ;;  %v2442_v13 = vstv %s2016_s12  ;;  %v80_v46 = vmul.f32 %v2435_v10, %v72_v44 }
  0x11   :  { %378 = vmatpush.msrb.mxu1 %v2395_v1  ;;  %759 = vmatpush.msra.mxu3 %v2418_v5 }
  0x12   :  { %631 = vmatpush.msrb.mxu2 %v2395_v1  ;;  %v86_v14 = vadd.f32 %v79_v12, %v64_v9  ;;  %v87_v47 = vadd.f32 %v80_v46, %v65_v45 }
  0x13   :  { %379 = vmatpush.msrb.mxu1 %v2400_v2 }
  0x14   :  { %632 = vmatpush.msrb.mxu2 %v2400_v2  ;;  %v94_v15 = vadd.f32 %v2442_v13, %v86_v14  ;;  %v95_v48 = vadd.f32 %v2442_v13, %v87_v47 }
  0x15   :  { %380 = vmatpush.msrb.mxu1 %v2410_v4 }
  0x16   :  { %633 = vmatpush.msrb.mxu2 %v2410_v4  ;;  %2018 = vmatmul.msk.f32.vlgmr.msra.gmra.mxu0 %vm110_vm1, %v94_v15 }
  0x17   :  { %381 = vmatpush.msrb.mxu1 %v2418_v5 }
  0x18   :  { %634 = vmatpush.msrb.mxu2 %v2418_v5 }
  0x19   :  { %505 = vmatpush.msra.mxu1 %v2395_v1 }
  0x1b   :  { %506 = vmatpush.msra.mxu1 %v2400_v2 }
  0x1d   :  { %507 = vmatpush.msra.mxu1 %v2410_v4 }
  0x1e   :  { %2019 = vmatmul.msk.f32.gmra.mxu0 %vm110_vm1, %v95_v48 }
  0x1f   :  { %508 = vmatpush.msra.mxu1 %v2418_v5 }
  0x8d   :  { %v195_v18 = vpop.f32.mrf.mxu1 }
  0x93   :  { %v153_v17 = vpop.f32.mrf.mxu0 }
  0x94   :  { %v154_v19 = vadd.f32 %v2460_v16, %v153_v17 }
  0x96   :  { %v198_v20 = vadd.f32 %v195_v18, %v154_v19 }
  0x98   :  { %2082 = vtanh.f32 %v198_v20  ;;  %v2025_v22 = vmul.f32 -1.442695, %v198_v20 }
  0x9a   :  { %2084 = vpow2.f32 %v2025_v22 }
  0x9b   :  { %v156_v52 = vpop.f32.mrf.mxu0 }
  0x9c   :  { %v2486_v54 = vadd.f32 %v2460_v16, %v156_v52  ;;  %v58_v52 = vld [vmem:[%s3045_s1 + $0x10] sm:$0xff] }
  0x9e   :  { %v2083_v21 = vpop.eup %2082 }
  0x9f   :  { %221 = vrot.lane.b32.xlu0 %v2083_v21, %s2324_s19 }
  0xa0   :  { %v2085_v23 = vpop.eup %2084 }
  0xa1   :  { %v202_v24 = vadd.f32 1.0, %v2085_v23 }
  0xa3   :  { %2086 = vrcp.f32 %v202_v24  ;;  %v214_v30 = vand.u32 2147483648, %v202_v24  ;;  %vm208_vm3 = vweird.f32 %v202_v24  ;;  %v212_v31 = vand.u32 2147483647, %v202_v24 }
  0xa5   :  { %v215_v33 = vor.u32 1.1754944e-38, %v214_v30  ;;  %vm213_vm5 = vcmp.eq.f32.partialorder %v212_v31, 8.507059e+37 }
  0xa9   :  { %v2087_v25 = vpop.eup %2086 }
  0xaa   :  { %v204_v26 = vmul.f32 %v2087_v25, %v202_v24  ;;  %vm209_vm2 = vweird.f32 %v2087_v25 }
  0xab   :  { %vm210_vm4 = vmor %vm208_vm3, %vm209_vm2  ;;  %vm433_vm2 = vcmask 1046528   ;;  %vm358_vm3 = vcmask 1040384  }
  0xac   :  { %v205_v27 = vsub.f32 1.0, %v204_v26 }
  0xae   :  { %v206_v28 = vmul.f32 %v2087_v25, %v205_v27 }
  0xb0   :  { %v207_v29 = vadd.f32 %v2087_v25, %v206_v28 }
  0xb2   :  { %v211_v32 = vsel %vm210_vm4, %v2087_v25, %v207_v29 }
  0xb3   :  { %v216_v35 = vsel %vm213_vm5, %v215_v33, %v211_v32 }
  0xb4   :  { %v219_v37 = vmul.f32 0.0, %v216_v35 }
 0x111   :  { %v222_v34 = vpop.permute.xlu0 %221 }
 0x112   :  { %v224_v36 = vmul.f32 %v222_v34, %v216_v35 }
 0x114   :  { %226 = vrot.lane.b32.xlu0 %v224_v36, %s2325_s20 }
 0x186   :  { %v227_v38 = vpop.permute.xlu0 %226 }
 0x187   :  { %v2465_v39 = vadd.f32 %v227_v38, %v219_v37 }
 0x189   :  { %2088 = vtanh.f32 %v2465_v39  ;;  %v310_v33 = vrot.slane %v2465_v39, 1 }
 0x18f   :  { %v2089_v40 = vpop.eup %2088 }
 0x190   :  { %232 = vrot.lane.b32.xlu1 %v2089_v40, %s2324_s19 }
 0x202   :  { %v233_v41 = vpop.permute.xlu1 %232 }
 0x203   :  { %v235_v42 = vmul.f32 %v233_v41, %v216_v35 }
 0x205   :  { %237 = vrot.lane.b32.xlu1 %v235_v42, %s2325_s20 }
 0x277   :  { %v238_v49 = vpop.permute.xlu1 %237 }
 0x278   :  { %241 = vst.msk [vmem:[#allocation2] sm:$0x7f] %vm240_vm6, %v238_v49  ;;  %2026 = vmatmul.msk.f32.vlgmr.msra.gmra.mxu2 %vm174_vm7, %v238_v49 }
 0x279   :  { %1008 = vmatpush.msra.mxu2 %v2395_v1 }
 0x27b   :  { %1009 = vmatpush.msra.mxu2 %v2400_v2 }
 0x27d   :  { %1010 = vmatpush.msra.mxu2 %v2410_v4 }
 0x27f   :  { %1011 = vmatpush.msra.mxu2 %v2418_v5 }
 0x2fb   :  { %v261_v50 = vpop.f32.mrf.mxu2 }
 0x2fc   :  { %v265_v51 = vrot.slane %v261_v50, 1 }
 0x2fe   :  { %v267_v53 = vadd.f32 %v265_v51, %v154_v19  ;;  %v268_v55 = vadd.f32 %v265_v51, %v2486_v54 }
 0x300   :  { %2090 = vtanh.f32 %v267_v53  ;;  %v2027_v58 = vmul.f32 -1.442695, %v267_v53  ;;  %v2028_v59 = vmul.f32 -1.442695, %v268_v55  ;;  %v73_v53 = vld [vmem:[%s3046_s2 + $0x10] sm:$0xff] }
 0x301   :  { %2092 = vtanh.f32 %v268_v55  ;;  %v66_v55 = vmul.f32 %v2431_v8, %v58_v52 }
 0x302   :  { %2094 = vpow2.f32 %v2027_v58 }
 0x303   :  { %2096 = vpow2.f32 %v2028_v59 }
 0x306   :  { %v2091_v56 = vpop.eup %2090 }
 0x307   :  { %316 = vrot.lane.b32.xlu2 %v2091_v56, %s2324_s19  ;;  %v2093_v57 = vpop.eup %2092  ;;  %v81_v56 = vmul.f32 %v2435_v10, %v73_v53 }
 0x308   :  { %v2095_v60 = vpop.eup %2094 }
 0x309   :  { %v275_v61 = vadd.f32 1.0, %v2095_v60  ;;  %v2097_v62 = vpop.eup %2096 }
 0x30a   :  { %v276_v63 = vadd.f32 1.0, %v2097_v62 }
 0x30b   :  { %2098 = vrcp.f32 %v275_v61  ;;  %v288_v17 = vand.u32 2147483648, %v275_v61  ;;  %vm282_vm9 = vweird.f32 %v275_v61  ;;  %v286_v18 = vand.u32 2147483647, %v275_v61 }
 0x30c   :  { %2100 = vrcp.f32 %v276_v63  ;;  %v303_v26 = vand.u32 2147483648, %v276_v63  ;;  %vm297_vm13 = vweird.f32 %v276_v63  ;;  %v301_v27 = vand.u32 2147483647, %v276_v63 }
 0x30d   :  { %v289_v21 = vor.u32 1.1754944e-38, %v288_v17  ;;  %vm287_vm11 = vcmp.eq.f32.partialorder %v286_v18, 8.507059e+37 }
 0x30e   :  { %v304_v29 = vor.u32 1.1754944e-38, %v303_v26  ;;  %vm302_vm15 = vcmp.eq.f32.partialorder %v301_v27, 8.507059e+37 }
 0x30f   :  { %318 = vrot.lane.b32.xlu2 %v2093_v57, %s2324_s19  ;;  %v88_v57 = vadd.f32 %v81_v56, %v66_v55 }
 0x311   :  { %v2099_v0 = vpop.eup %2098  ;;  %v96_v58 = vadd.f32 %v2442_v13, %v88_v57 }
 0x312   :  { %v278_v3 = vmul.f32 %v2099_v0, %v275_v61  ;;  %v2101_v7 = vpop.eup %2100  ;;  %vm283_vm8 = vweird.f32 %v2099_v0 }
 0x313   :  { %v293_v12 = vmul.f32 %v2101_v7, %v276_v63  ;;  %vm284_vm10 = vmor %vm282_vm9, %vm283_vm8  ;;  %vm298_vm12 = vweird.f32 %v2101_v7  ;;  %2020 = vmatmul.msk.f32.gmra.mxu0 %vm110_vm1, %v96_v58 }
 0x314   :  { %v279_v6 = vsub.f32 1.0, %v278_v3  ;;  %vm299_vm14 = vmor %vm297_vm13, %vm298_vm12  ;;  %vm485_vm13 = vcmask 1041408  }
 0x315   :  { %v294_v15 = vsub.f32 1.0, %v293_v12 }
 0x316   :  { %v280_v9 = vmul.f32 %v2099_v0, %v279_v6 }
 0x317   :  { %v295_v20 = vmul.f32 %v2101_v7, %v294_v15 }
 0x318   :  { %v281_v14 = vadd.f32 %v2099_v0, %v280_v9 }
 0x319   :  { %v296_v25 = vadd.f32 %v2101_v7, %v295_v20 }
 0x31a   :  { %v285_v19 = vsel %vm284_vm10, %v2099_v0, %v281_v14 }
 0x31b   :  { %v290_v23 = vsel %vm287_vm11, %v289_v21, %v285_v19  ;;  %v300_v28 = vsel %vm299_vm14, %v2101_v7, %v296_v25 }
 0x31c   :  { %v305_v30 = vsel %vm302_vm15, %v304_v29, %v300_v28  ;;  %v312_v34 = vmul.f32 %v310_v33, %v290_v23 }
 0x31d   :  { %v313_v37 = vmul.f32 %v310_v33, %v305_v30 }
 0x361   :  { %v317_v22 = vpop.permute.xlu2 %316 }
 0x362   :  { %v322_v24 = vmul.f32 %v317_v22, %v290_v23 }
 0x364   :  { %326 = vrot.lane.b32.xlu0 %v322_v24, %s2325_s20 }
 0x369   :  { %v319_v31 = vpop.permute.xlu2 %318 }
 0x36a   :  { %v323_v32 = vmul.f32 %v319_v31, %v305_v30 }
 0x36c   :  { %328 = vrot.lane.b32.xlu1 %v323_v32, %s2325_s20 }
 0x390   :  { %v159_v60 = vpop.f32.mrf.mxu0 }
 0x391   :  { %v2529_v61 = vadd.f32 %v2460_v16, %v159_v60  ;;  %v74_v60 = vld [vmem:[%s3046_s2 + $0x18] sm:$0xff] }
 0x3d6   :  { %v327_v35 = vpop.permute.xlu0 %326 }
 0x3d7   :  { %v332_v36 = vadd.f32 %v327_v35, %v312_v34 }
 0x3d9   :  { %2102 = vtanh.f32 %v332_v36  ;;  %v434_v42 = vrot.slane %v332_v36, 1 }
 0x3de   :  { %v329_v38 = vpop.permute.xlu1 %328 }
 0x3df   :  { %v2103_v40 = vpop.eup %2102  ;;  %v2494_v41 = vadd.f32 %v329_v38, %v313_v37 }
 0x3e0   :  { %338 = vrot.lane.b32.xlu2 %v2103_v40, %s2324_s19 }
 0x3e1   :  { %2104 = vtanh.f32 %v2494_v41  ;;  %v435_v43 = vrot.slane %v2494_v41, 1 }
 0x3e3   :  { %v2502_v39 = vsel %vm433_vm2, %v434_v42, %v435_v43 }
 0x3e7   :  { %v2105_v44 = vpop.eup %2104 }
 0x3e8   :  { %340 = vrot.lane.b32.xlu0 %v2105_v44, %s2324_s19 }
 0x43a   :  { %v339_v45 = vpop.permute.xlu2 %338 }
 0x43b   :  { %v2505_v46 = vmul.f32 %v339_v45, %v290_v23 }
 0x43d   :  { %v359_v49 = vrot.slane %v2505_v46, 7 }
 0x45a   :  { %v341_v47 = vpop.permute.xlu0 %340 }
 0x45b   :  { %v2507_v48 = vmul.f32 %v341_v47, %v305_v30 }
 0x45d   :  { %v360_v50 = vrot.slane %v2507_v48, 7 }
 0x45f   :  { %v361_v51 = vsel %vm358_vm3, %v359_v49, %v360_v50 }
 0x460   :  { %362 = vrot.lane.b32.xlu1 %v361_v51, %s2325_s20 }
 0x4d2   :  { %v363_v59 = vpop.permute.xlu1 %362 }
 0x4d3   :  { %2029 = vmatmul.msk.f32.vlgmr.msrb.gmra.mxu1 %vm174_vm7, %v363_v59  ;;  %v59_v59 = vld [vmem:[%s3045_s1 + $0x18] sm:$0xff] }
 0x4d4   :  { %882 = vmatpush.msrb.mxu1 %v2395_v1 }
 0x4d6   :  { %883 = vmatpush.msrb.mxu1 %v2400_v2 }
 0x4d8   :  { %884 = vmatpush.msrb.mxu1 %v2410_v4 }
 0x4da   :  { %885 = vmatpush.msrb.mxu1 %v2418_v5 }
 0x550   :  { %v383_v62 = vpop.f32.mrf.mxu1 }
 0x551   :  { %v387_v63 = vrot.slane %v383_v62, 2  ;;  %v67_v62 = vmul.f32 %v2431_v8, %v59_v59 }
 0x553   :  { %v389_v0 = vadd.f32 %v387_v63, %v2486_v54  ;;  %v390_v3 = vadd.f32 %v387_v63, %v2529_v61  ;;  %v82_v63 = vmul.f32 %v2435_v10, %v74_v60 }
 0x555   :  { %2106 = vtanh.f32 %v389_v0  ;;  %v2030_v2 = vmul.f32 -1.442695, %v389_v0  ;;  %v2031_v9 = vmul.f32 -1.442695, %v390_v3  ;;  %v89_v0 = vadd.f32 %v82_v63, %v67_v62 }
 0x556   :  { %2108 = vtanh.f32 %v390_v3 }
 0x557   :  { %2110 = vpow2.f32 %v2030_v2  ;;  %v97_v3 = vadd.f32 %v2442_v13, %v89_v0 }
 0x559   :  { %2021 = vmatmul.msk.f32.gmra.mxu0 %vm110_vm1, %v97_v3 }
 0x55b   :  { %v2107_v6 = vpop.eup %2106 }
 0x55c   :  { %v2109_v1 = vpop.eup %2108  ;;  %443 = vrot.lane.b32.xlu2 %v2107_v6, %s2324_s19 }
 0x55d   :  { %445 = vrot.lane.b32.xlu0 %v2109_v1, %s2324_s19  ;;  %v2111_v4 = vpop.eup %2110 }
 0x55e   :  { %v397_v5 = vadd.f32 1.0, %v2111_v4 }
 0x560   :  { %2112 = vrcp.f32 %v397_v5  ;;  %v410_v19 = vand.u32 2147483648, %v397_v5  ;;  %vm404_vm5 = vweird.f32 %v397_v5  ;;  %v408_v20 = vand.u32 2147483647, %v397_v5 }
 0x561   :  { %2114 = vpow2.f32 %v2031_v9 }
 0x562   :  { %v411_v22 = vor.u32 1.1754944e-38, %v410_v19  ;;  %vm409_vm8 = vcmp.eq.f32.partialorder %v408_v20, 8.507059e+37 }
 0x566   :  { %v2113_v7 = vpop.eup %2112 }
 0x567   :  { %v400_v12 = vmul.f32 %v2113_v7, %v397_v5  ;;  %v2115_v15 = vpop.eup %2114  ;;  %vm405_vm4 = vweird.f32 %v2113_v7 }
 0x568   :  { %v398_v17 = vadd.f32 1.0, %v2115_v15  ;;  %vm406_vm6 = vmor %vm404_vm5, %vm405_vm4 }
 0x569   :  { %v401_v54 = vsub.f32 1.0, %v400_v12 }
 0x56a   :  { %2116 = vrcp.f32 %v398_v17  ;;  %v425_v31 = vand.u32 2147483648, %v398_v17  ;;  %vm419_vm10 = vweird.f32 %v398_v17  ;;  %v423_v32 = vand.u32 2147483647, %v398_v17 }
 0x56b   :  { %v402_v14 = vmul.f32 %v2113_v7, %v401_v54 }
 0x56c   :  { %v426_v34 = vor.u32 1.1754944e-38, %v425_v31  ;;  %vm424_vm12 = vcmp.eq.f32.partialorder %v423_v32, 8.507059e+37 }
 0x56d   :  { %v403_v18 = vadd.f32 %v2113_v7, %v402_v14 }
 0x56f   :  { %v407_v21 = vsel %vm406_vm6, %v2113_v7, %v403_v18 }
 0x570   :  { %v412_v24 = vsel %vm409_vm8, %v411_v22, %v407_v21  ;;  %v2117_v26 = vpop.eup %2116 }
 0x571   :  { %v415_v27 = vmul.f32 %v2117_v26, %v398_v17  ;;  %vm420_vm9 = vweird.f32 %v2117_v26  ;;  %v439_v38 = vmul.f32 %v2502_v39, %v412_v24 }
 0x572   :  { %vm421_vm11 = vmor %vm419_vm10, %vm420_vm9 }
 0x573   :  { %v416_v28 = vsub.f32 1.0, %v415_v27 }
 0x575   :  { %v417_v29 = vmul.f32 %v2117_v26, %v416_v28 }
 0x577   :  { %v418_v30 = vadd.f32 %v2117_v26, %v417_v29 }
 0x579   :  { %v422_v33 = vsel %vm421_vm11, %v2117_v26, %v418_v30  ;;  %vm611_vm11 = vcmask 1042432  }
 0x57a   :  { %v427_v36 = vsel %vm424_vm12, %v426_v34, %v422_v33 }
 0x57b   :  { %v440_v40 = vmul.f32 %v435_v43, %v427_v36 }
 0x5b6   :  { %v444_v23 = vpop.permute.xlu2 %443 }
 0x5b7   :  { %v449_v25 = vmul.f32 %v444_v23, %v412_v24 }
 0x5b9   :  { %453 = vrot.lane.b32.xlu1 %v449_v25, %s2325_s20 }
 0x5cf   :  { %v446_v35 = vpop.permute.xlu0 %445 }
 0x5d0   :  { %v450_v37 = vmul.f32 %v446_v35, %v427_v36 }
 0x5d2   :  { %455 = vrot.lane.b32.xlu2 %v450_v37, %s2325_s20 }
 0x5d6   :  { %v162_v1 = vpop.f32.mrf.mxu0 }
 0x5d7   :  { %v2571_v2 = vadd.f32 %v2460_v16, %v162_v1 }
 0x62b   :  { %v454_v42 = vpop.permute.xlu1 %453 }
 0x62c   :  { %v456_v44 = vpop.permute.xlu2 %455  ;;  %v459_v45 = vadd.f32 %v454_v42, %v439_v38 }
 0x62d   :  { %v2540_v47 = vadd.f32 %v456_v44, %v440_v40 }
 0x62e   :  { %2118 = vtanh.f32 %v459_v45  ;;  %v560_v49 = vrot.slane %v459_v45, 1 }
 0x62f   :  { %2120 = vtanh.f32 %v2540_v47  ;;  %v561_v50 = vrot.slane %v2540_v47, 1 }
 0x631   :  { %v2547_v51 = vsel %vm433_vm2, %v560_v49, %v561_v50 }
 0x634   :  { %v2119_v39 = vpop.eup %2118 }
 0x635   :  { %v2121_v52 = vpop.eup %2120  ;;  %465 = vrot.lane.b32.xlu0 %v2119_v39, %s2324_s19 }
 0x636   :  { %467 = vrot.lane.b32.xlu1 %v2121_v52, %s2324_s19 }
 0x6a7   :  { %v466_v41 = vpop.permute.xlu0 %465 }
 0x6a8   :  { %v468_v43 = vpop.permute.xlu1 %467  ;;  %v2551_v53 = vmul.f32 %v466_v41, %v412_v24 }
 0x6a9   :  { %v2553_v55 = vmul.f32 %v468_v43, %v427_v36 }
 0x6aa   :  { %v486_v56 = vrot.slane %v2551_v53, 6 }
 0x6ab   :  { %v487_v57 = vrot.slane %v2553_v55, 6 }
 0x6ad   :  { %v488_v58 = vsel %vm485_vm13, %v486_v56, %v487_v57 }
 0x6ae   :  { %489 = vrot.lane.b32.xlu2 %v488_v58, %s2325_s20 }
 0x708   :  { %v490_v6 = vpop.permute.xlu2 %489 }
 0x709   :  { %2032 = vmatmul.msk.f32.vlgmr.msra.gmra.mxu1 %vm174_vm7, %v490_v6 }
 0x786   :  { %v510_v4 = vpop.f32.mrf.mxu1 }
 0x787   :  { %v514_v5 = vrot.slane %v510_v4, 3  ;;  %v60_v4 = vld [vmem:[%s3045_s1 + $0x20] sm:$0xff] }
 0x789   :  { %v516_v7 = vadd.f32 %v514_v5, %v2529_v61  ;;  %v517_v9 = vadd.f32 %v514_v5, %v2571_v2  ;;  %v75_v5 = vld [vmem:[%s3046_s2 + $0x20] sm:$0xff] }
 0x78b   :  { %2122 = vtanh.f32 %v516_v7  ;;  %v2033_v14 = vmul.f32 -1.442695, %v516_v7  ;;  %v2034_v15 = vmul.f32 -1.442695, %v517_v9  ;;  %v68_v7 = vmul.f32 %v2431_v8, %v60_v4 }
 0x78c   :  { %2124 = vtanh.f32 %v517_v9  ;;  %v83_v9 = vmul.f32 %v2435_v10, %v75_v5 }
 0x78d   :  { %2126 = vpow2.f32 %v2033_v14 }
 0x78e   :  { %2128 = vpow2.f32 %v2034_v15 }
 0x791   :  { %v2123_v12 = vpop.eup %2122 }
 0x792   :  { %v2125_v54 = vpop.eup %2124  ;;  %569 = vrot.lane.b32.xlu0 %v2123_v12, %s2324_s19  ;;  %v90_v12 = vadd.f32 %v83_v9, %v68_v7 }
 0x793   :  { %571 = vrot.lane.b32.xlu1 %v2125_v54, %s2324_s19  ;;  %v2127_v17 = vpop.eup %2126 }
 0x794   :  { %v2129_v18 = vpop.eup %2128  ;;  %v524_v19 = vadd.f32 1.0, %v2127_v17  ;;  %v98_v54 = vadd.f32 %v2442_v13, %v90_v12 }
 0x795   :  { %v525_v20 = vadd.f32 1.0, %v2129_v18 }
 0x796   :  { %2130 = vrcp.f32 %v524_v19  ;;  %v537_v30 = vand.u32 2147483648, %v524_v19  ;;  %vm531_vm4 = vweird.f32 %v524_v19  ;;  %v535_v32 = vand.u32 2147483647, %v524_v19  ;;  %2022 = vmatmul.msk.f32.gmra.mxu0 %vm110_vm1, %v98_v54 }
 0x797   :  { %2132 = vrcp.f32 %v525_v20  ;;  %v552_v31 = vand.u32 2147483648, %v525_v20  ;;  %vm546_vm5 = vweird.f32 %v525_v20  ;;  %v550_v33 = vand.u32 2147483647, %v525_v20 }
 0x798   :  { %v538_v36 = vor.u32 1.1754944e-38, %v537_v30  ;;  %vm536_vm9 = vcmp.eq.f32.partialorder %v535_v32, 8.507059e+37 }
 0x799   :  { %v553_v37 = vor.u32 1.1754944e-38, %v552_v31  ;;  %vm551_vm10 = vcmp.eq.f32.partialorder %v550_v33, 8.507059e+37 }
 0x79c   :  { %v2131_v61 = vpop.eup %2130 }
 0x79d   :  { %v2133_v21 = vpop.eup %2132  ;;  %v527_v22 = vmul.f32 %v2131_v61, %v524_v19  ;;  %vm532_vm14 = vweird.f32 %v2131_v61 }
 0x79e   :  { %v542_v23 = vmul.f32 %v2133_v21, %v525_v20  ;;  %vm547_vm15 = vweird.f32 %v2133_v21  ;;  %vm533_vm6 = vmor %vm531_vm4, %vm532_vm14 }
 0x79f   :  { %v528_v24 = vsub.f32 1.0, %v527_v22  ;;  %vm548_vm8 = vmor %vm546_vm5, %vm547_vm15 }
 0x7a0   :  { %v543_v25 = vsub.f32 1.0, %v542_v23 }
 0x7a1   :  { %v529_v26 = vmul.f32 %v2131_v61, %v528_v24 }
 0x7a2   :  { %v544_v27 = vmul.f32 %v2133_v21, %v543_v25 }
 0x7a3   :  { %v530_v28 = vadd.f32 %v2131_v61, %v529_v26 }
 0x7a4   :  { %v545_v29 = vadd.f32 %v2133_v21, %v544_v27 }
 0x7a5   :  { %v534_v34 = vsel %vm533_vm6, %v2131_v61, %v530_v28 }
 0x7a6   :  { %v549_v35 = vsel %vm548_vm8, %v2133_v21, %v545_v29  ;;  %v539_v40 = vsel %vm536_vm9, %v538_v36, %v534_v34 }
 0x7a7   :  { %v554_v44 = vsel %vm551_vm10, %v553_v37, %v549_v35  ;;  %v565_v39 = vmul.f32 %v2547_v51, %v539_v40 }
 0x7a8   :  { %v566_v56 = vmul.f32 %v561_v50, %v554_v44 }
 0x804   :  { %v570_v38 = vpop.permute.xlu0 %569 }
 0x805   :  { %v572_v42 = vpop.permute.xlu1 %571  ;;  %v575_v45 = vmul.f32 %v570_v38, %v539_v40 }
 0x806   :  { %v576_v49 = vmul.f32 %v572_v42, %v554_v44 }
 0x807   :  { %579 = vrot.lane.b32.xlu2 %v575_v45, %s2325_s20 }
 0x808   :  { %581 = vrot.lane.b32.xlu0 %v576_v49, %s2325_s20 }
 0x813   :  { %v165_v15 = vpop.f32.mrf.mxu0 }
 0x814   :  { %v2613_v17 = vadd.f32 %v2460_v16, %v165_v15 }
 0x861   :  { %v580_v52 = vpop.permute.xlu2 %579 }
 0x862   :  { %v585_v41 = vadd.f32 %v580_v52, %v565_v39 }
 0x864   :  { %2134 = vtanh.f32 %v585_v41  ;;  %v686_v59 = vrot.slane %v585_v41, 1 }
 0x86a   :  { %v2135_v43 = vpop.eup %2134 }
 0x86b   :  { %591 = vrot.lane.b32.xlu1 %v2135_v43, %s2324_s19 }
 0x87a   :  { %v582_v57 = vpop.permute.xlu0 %581 }
 0x87b   :  { %v2583_v58 = vadd.f32 %v582_v57, %v566_v56 }
 0x87d   :  { %2136 = vtanh.f32 %v2583_v58  ;;  %v687_v60 = vrot.slane %v2583_v58, 1 }
 0x87f   :  { %v2590_v51 = vsel %vm433_vm2, %v686_v59, %v687_v60 }
 0x883   :  { %v2137_v62 = vpop.eup %2136 }
 0x884   :  { %593 = vrot.lane.b32.xlu2 %v2137_v62, %s2324_s19 }
 0x8dd   :  { %v592_v63 = vpop.permute.xlu1 %591 }
 0x8de   :  { %v594_v0 = vpop.permute.xlu2 %593  ;;  %v2593_v47 = vmul.f32 %v592_v63, %v539_v40 }
 0x8df   :  { %v2595_v50 = vmul.f32 %v594_v0, %v554_v44 }
 0x8e0   :  { %v612_v3 = vrot.slane %v2593_v47, 5 }
 0x8e1   :  { %v613_v6 = vrot.slane %v2595_v50, 5 }
 0x8e3   :  { %v614_v1 = vsel %vm611_vm11, %v612_v3, %v613_v6 }
 0x8e4   :  { %615 = vrot.lane.b32.xlu0 %v614_v1, %s2325_s20 }
 0x956   :  { %v616_v14 = vpop.permute.xlu0 %615 }
 0x957   :  { %2035 = vmatmul.msk.f32.vlgmr.msrb.gmra.mxu2 %vm174_vm7, %v616_v14 }
 0x9da   :  { %v636_v18 = vpop.f32.mrf.mxu2 }
 0x9db   :  { %v640_v19 = vrot.slane %v636_v18, 4 }
 0x9dd   :  { %v642_v20 = vadd.f32 %v640_v19, %v2571_v2  ;;  %v643_v61 = vadd.f32 %v640_v19, %v2613_v17 }
 0x9df   :  { %2138 = vtanh.f32 %v642_v20  ;;  %v2037_v23 = vmul.f32 -1.442695, %v643_v61  ;;  %v2036_v27 = vmul.f32 -1.442695, %v642_v20  ;;  %v61_v20 = vld [vmem:[%s3045_s1 + $0x28] sm:$0xff] }
 0x9e0   :  { %2140 = vtanh.f32 %v643_v61  ;;  %v76_v61 = vld [vmem:[%s3046_s2 + $0x28] sm:$0xff] }
 0x9e1   :  { %2142 = vpow2.f32 %v2037_v23 }
 0x9e5   :  { %v2139_v21 = vpop.eup %2138 }
 0x9e6   :  { %v2141_v22 = vpop.eup %2140  ;;  %695 = vrot.lane.b32.xlu1 %v2139_v21, %s2324_s19  ;;  %v69_v21 = vmul.f32 %v2431_v8, %v61_v20 }
 0x9e7   :  { %697 = vrot.lane.b32.xlu2 %v2141_v22, %s2324_s19  ;;  %v2143_v24 = vpop.eup %2142  ;;  %v84_v22 = vmul.f32 %v2435_v10, %v76_v61 }
 0x9e8   :  { %v651_v25 = vadd.f32 1.0, %v2143_v24 }
 0x9e9   :  { %v91_v23 = vadd.f32 %v84_v22, %v69_v21 }
 0x9ea   :  { %2144 = vrcp.f32 %v651_v25  ;;  %v678_v33 = vand.u32 2147483648, %v651_v25  ;;  %vm672_vm14 = vweird.f32 %v651_v25  ;;  %v676_v34 = vand.u32 2147483647, %v651_v25 }
 0x9eb   :  { %2146 = vpow2.f32 %v2036_v27  ;;  %v99_v24 = vadd.f32 %v2442_v13, %v91_v23 }
 0x9ec   :  { %v679_v36 = vor.u32 1.1754944e-38, %v678_v33  ;;  %vm677_vm4 = vcmp.eq.f32.partialorder %v676_v34, 8.507059e+37 }
 0x9ed   :  { %2023 = vmatmul.msk.f32.gmra.mxu0 %vm110_vm1, %v99_v24 }
 0x9f0   :  { %v2145_v26 = vpop.eup %2144 }
 0x9f1   :  { %v668_v28 = vmul.f32 %v2145_v26, %v651_v25  ;;  %v2147_v29 = vpop.eup %2146  ;;  %vm673_vm12 = vweird.f32 %v2145_v26 }
 0x9f2   :  { %v650_v31 = vadd.f32 1.0, %v2147_v29  ;;  %vm674_vm15 = vmor %vm672_vm14, %vm673_vm12 }
 0x9f3   :  { %v669_v2 = vsub.f32 1.0, %v668_v28 }
 0x9f4   :  { %2148 = vrcp.f32 %v650_v31  ;;  %v663_v52 = vand.u32 2147483648, %v650_v31  ;;  %vm657_vm6 = vweird.f32 %v650_v31  ;;  %v661_v41 = vand.u32 2147483647, %v650_v31 }
 0x9f5   :  { %v670_v30 = vmul.f32 %v2145_v26, %v669_v2 }
 0x9f6   :  { %v664_v56 = vor.u32 1.1754944e-38, %v663_v52  ;;  %vm662_vm9 = vcmp.eq.f32.partialorder %v661_v41, 8.507059e+37 }
 0x9f7   :  { %v671_v32 = vadd.f32 %v2145_v26, %v670_v30 }
 0x9f9   :  { %v675_v35 = vsel %vm674_vm15, %v2145_v26, %v671_v32 }
 0x9fa   :  { %v680_v38 = vsel %vm677_vm4, %v679_v36, %v675_v35  ;;  %v2149_v40 = vpop.eup %2148 }
 0x9fb   :  { %v653_v44 = vmul.f32 %v2149_v40, %v650_v31  ;;  %vm658_vm5 = vweird.f32 %v2149_v40  ;;  %v692_v63 = vmul.f32 %v687_v60, %v680_v38 }
 0x9fc   :  { %vm659_vm8 = vmor %vm657_vm6, %vm658_vm5 }
 0x9fd   :  { %v654_v45 = vsub.f32 1.0, %v653_v44 }
 0x9ff   :  { %v655_v49 = vmul.f32 %v2149_v40, %v654_v45 }
 0xa01   :  { %v656_v39 = vadd.f32 %v2149_v40, %v655_v49 }
 0xa03   :  { %v660_v43 = vsel %vm659_vm8, %v2149_v40, %v656_v39 }
 0xa04   :  { %v665_v59 = vsel %vm662_vm9, %v664_v56, %v660_v43  ;;  %vm354_vm9 = vcmask 261127  }
 0xa05   :  { %v691_v1 = vmul.f32 %v2590_v51, %v665_v59 }
 0xa41   :  { %v698_v37 = vpop.permute.xlu2 %697 }
 0xa42   :  { %v702_v42 = vmul.f32 %v698_v37, %v680_v38 }
 0xa44   :  { %707 = vrot.lane.b32.xlu1 %v702_v42, %s2325_s20 }
 0xa58   :  { %v696_v57 = vpop.permute.xlu1 %695 }
 0xa59   :  { %v701_v62 = vmul.f32 %v696_v57, %v665_v59 }
 0xa5b   :  { %705 = vrot.lane.b32.xlu0 %v701_v62, %s2325_s20 }
 0xa6a   :  { %v168_v26 = vpop.f32.mrf.mxu0 }
 0xa6b   :  { %v2655_v27 = vadd.f32 %v2460_v16, %v168_v26 }
 0xab6   :  { %v708_v0 = vpop.permute.xlu1 %707 }
 0xab7   :  { %v2623_v3 = vadd.f32 %v708_v0, %v692_v63 }
 0xab9   :  { %2150 = vtanh.f32 %v2623_v3  ;;  %v812_v7 = vrot.slane %v2623_v3, 1 }
 0xabf   :  { %v2151_v6 = vpop.eup %2150 }
 0xac0   :  { %719 = vrot.lane.b32.xlu0 %v2151_v6, %s2324_s19 }
 0xacd   :  { %v706_v4 = vpop.permute.xlu0 %705 }
 0xace   :  { %v711_v5 = vadd.f32 %v706_v4, %v691_v1 }
 0xad0   :  { %2152 = vtanh.f32 %v711_v5  ;;  %v811_v9 = vrot.slane %v711_v5, 1 }
 0xad2   :  { %v2632_v58 = vsel %vm433_vm2, %v811_v9, %v812_v7 }
 0xad6   :  { %v2153_v60 = vpop.eup %2152 }
 0xad7   :  { %717 = vrot.lane.b32.xlu2 %v2153_v60, %s2324_s19 }
 0xb31   :  { %v718_v12 = vpop.permute.xlu2 %717 }
 0xb32   :  { %v720_v54 = vpop.permute.xlu0 %719  ;;  %v2635_v14 = vmul.f32 %v718_v12, %v665_v59 }
 0xb33   :  { %v2637_v15 = vmul.f32 %v720_v54, %v680_v38  ;;  %v1083_v54 = vld [vmem:[%s3050_s6 + $0x18] sm:$0xff] }
 0xb34   :  { %v737_v51 = vrot.slane %v2635_v14, 4  ;;  %1121 = vmatpush.msrb.mxu3 %v1083_v54 }
 0xb35   :  { %v738_v18 = vrot.slane %v2637_v15, 4 }
 0xb37   :  { %v739_v19 = vsel %vm132_vm0, %v737_v51, %v738_v18  ;;  %v1082_v51 = vld [vmem:[%s3050_s6 + $0x10] sm:$0xff]  ;;  %v1081_v18 = vld [vmem:[%s3050_s6 + $0x8] sm:$0xff] }
 0xb38   :  { %740 = vrot.lane.b32.xlu1 %v739_v19, %s2325_s20  ;;  %1122 = vmatpush.msrb.mxu3 %v1082_v51  ;;  %v1080_v19 = vld [vmem:[%s3050_s6] sm:$0xff] }
 0xb3a   :  { %1123 = vmatpush.msrb.mxu3 %v1081_v18 }
 0xb3c   :  { %1124 = vmatpush.msrb.mxu3 %v1080_v19 }
 0xbaa   :  { %v741_v25 = vpop.permute.xlu1 %740 }
 0xbab   :  { %2038 = vmatmul.msk.f32.vlgmr.msra.gmra.mxu3 %vm174_vm7, %v741_v25 }
 0xc2e   :  { %v761_v28 = vpop.f32.mrf.mxu3 }
 0xc2f   :  { %v765_v2 = vrot.slane %v761_v28, 5 }
 0xc31   :  { %v767_v29 = vadd.f32 %v765_v2, %v2613_v17  ;;  %v768_v30 = vadd.f32 %v765_v2, %v2655_v27 }
 0xc33   :  { %2154 = vtanh.f32 %v767_v29  ;;  %v2039_v33 = vmul.f32 -1.442695, %v767_v29  ;;  %v2040_v36 = vmul.f32 -1.442695, %v768_v30 }
 0xc34   :  { %2156 = vtanh.f32 %v768_v30 }
 0xc35   :  { %2158 = vpow2.f32 %v2039_v33 }
 0xc39   :  { %v2155_v31 = vpop.eup %2154 }
 0xc3a   :  { %v2157_v32 = vpop.eup %2156  ;;  %820 = vrot.lane.b32.xlu2 %v2155_v31, %s2324_s19 }
 0xc3b   :  { %822 = vrot.lane.b32.xlu0 %v2157_v32, %s2324_s19  ;;  %v2159_v34 = vpop.eup %2158 }
 0xc3c   :  { %v775_v35 = vadd.f32 1.0, %v2159_v34 }
 0xc3e   :  { %2160 = vrcp.f32 %v775_v35  ;;  %v788_v45 = vand.u32 2147483648, %v775_v35  ;;  %vm782_vm12 = vweird.f32 %v775_v35  ;;  %v786_v49 = vand.u32 2147483647, %v775_v35 }
 0xc3f   :  { %2162 = vpow2.f32 %v2040_v36 }
 0xc40   :  { %v789_v52 = vor.u32 1.1754944e-38, %v788_v45  ;;  %vm787_vm15 = vcmp.eq.f32.partialorder %v786_v49, 8.507059e+37  ;;  %v2306_v45 = vld [vmem:[%s3049_s5] ss:$0 sm:$0xff] }
 0xc44   :  { %v2161_v16 = vpop.eup %2160 }
 0xc45   :  { %v778_v37 = vmul.f32 %v2161_v16, %v775_v35  ;;  %v2163_v40 = vpop.eup %2162  ;;  %vm783_vm10 = vweird.f32 %v2161_v16  ;;  %v62_v35 = vld [vmem:[%s3045_s1 + $0x30] sm:$0xff] }
 0xc46   :  { %v776_v42 = vadd.f32 1.0, %v2163_v40  ;;  %vm784_vm14 = vmor %vm782_vm12, %vm783_vm10  ;;  %vm862_vm10 = vcmask 1044480   ;;  %v70_v36 = vmul.f32 %v2431_v8, %v62_v35  ;;  %v2713_v40 = vld [vmem:[%s3051_s7 + $0x18] sm:$0xff]  ;;  %v2725_v8 = vld [vmem:[%s3051_s7 + $0x8] sm:$0xff] }
 0xc47   :  { %v779_v17 = vsub.f32 1.0, %v778_v37  ;;  %1159 = vmatpush.msra.mxu1 %v2713_v40  ;;  %1222 = vmatpush.msrb.mxu2 %v2713_v40 }
 0xc48   :  { %2164 = vrcp.f32 %v776_v42  ;;  %v803_v6 = vand.u32 2147483648, %v776_v42  ;;  %vm797_vm5 = vweird.f32 %v776_v42  ;;  %v801_v1 = vand.u32 2147483647, %v776_v42 }
 0xc49   :  { %v780_v38 = vmul.f32 %v2161_v16, %v779_v17 }
 0xc4a   :  { %v804_v5 = vor.u32 1.1754944e-38, %v803_v6  ;;  %vm802_vm8 = vcmp.eq.f32.partialorder %v801_v1, 8.507059e+37 }
 0xc4b   :  { %v781_v44 = vadd.f32 %v2161_v16, %v780_v38 }
 0xc4d   :  { %v785_v39 = vsel %vm784_vm14, %v2161_v16, %v781_v44  ;;  %v77_v16 = vld [vmem:[%s3046_s2 + $0x30] sm:$0xff] }
 0xc4e   :  { %v790_v43 = vsel %vm787_vm15, %v789_v52, %v785_v39  ;;  %v2165_v57 = vpop.eup %2164  ;;  %v85_v37 = vmul.f32 %v2435_v10, %v77_v16  ;;  %v2732_v10 = vld [vmem:[%s3051_s7] sm:$0xff] }
 0xc4f   :  { %v793_v59 = vmul.f32 %v2165_v57, %v776_v42  ;;  %vm798_vm4 = vweird.f32 %v2165_v57  ;;  %v2718_v42 = vld [vmem:[%s3051_s7 + $0x10] sm:$0xff] }
 0xc50   :  { %vm799_vm6 = vmor %vm797_vm5, %vm798_vm4  ;;  %v92_v17 = vadd.f32 %v85_v37, %v70_v36  ;;  %1160 = vmatpush.msra.mxu1 %v2718_v42  ;;  %1223 = vmatpush.msrb.mxu2 %v2718_v42 }
 0xc51   :  { %v794_v62 = vsub.f32 1.0, %v793_v59 }
 0xc52   :  { %v100_v38 = vadd.f32 %v2442_v13, %v92_v17  ;;  %1161 = vmatpush.msra.mxu1 %v2725_v8  ;;  %1224 = vmatpush.msrb.mxu2 %v2725_v8 }
 0xc53   :  { %v795_v63 = vmul.f32 %v2165_v57, %v794_v62 }
 0xc54   :  { %2024 = vmatmul.msk.f32.gmra.mxu0 %vm110_vm1, %v100_v38  ;;  %1162 = vmatpush.msra.mxu1 %v2732_v10 }
 0xc55   :  { %v796_v0 = vadd.f32 %v2165_v57, %v795_v63  ;;  %1225 = vmatpush.msrb.mxu2 %v2732_v10 }
 0xc57   :  { %v800_v4 = vsel %vm799_vm6, %v2165_v57, %v796_v0 }
 0xc58   :  { %v805_v60 = vsel %vm802_vm8, %v804_v5, %v800_v4 }
 0xc59   :  { %v817_v20 = vmul.f32 %v812_v7, %v805_v60 }
 0xc94   :  { %v821_v41 = vpop.permute.xlu2 %820 }
 0xc95   :  { %v826_v56 = vmul.f32 %v821_v41, %v790_v43 }
 0xc97   :  { %830 = vrot.lane.b32.xlu1 %v826_v56, %s2325_s20 }
 0xcad   :  { %v823_v9 = vpop.permute.xlu0 %822 }
 0xcae   :  { %v827_v12 = vmul.f32 %v823_v9, %v805_v60 }
 0xcb0   :  { %832 = vrot.lane.b32.xlu2 %v827_v12, %s2325_s20 }
 0xcb8   :  { %348 = vrot.lane.b32.xlu2 %v2505_v46, %s2325_s20  ;;  %v816_v46 = vmul.f32 %v2632_v58, %v790_v43 }
 0xcd1   :  { %v171_v44 = vpop.f32.mrf.mxu0 }
 0xcd2   :  { %v2751_v49 = vadd.f32 %v2306_v45, %v171_v44 }
 0xd09   :  { %v831_v61 = vpop.permute.xlu1 %830 }
 0xd0a   :  { %v833_v21 = vpop.permute.xlu2 %832  ;;  %v836_v22 = vadd.f32 %v831_v61, %v816_v46 }
 0xd0b   :  { %v2680_v23 = vadd.f32 %v833_v21, %v817_v20 }
 0xd0c   :  { %2166 = vtanh.f32 %v836_v22  ;;  %v937_v24 = vrot.slane %v836_v22, 1 }
 0xd0d   :  { %2168 = vtanh.f32 %v2680_v23  ;;  %v938_v25 = vrot.slane %v2680_v23, 1 }
 0xd0f   :  { %v2687_v26 = vsel %vm433_vm2, %v937_v24, %v938_v25 }
 0xd12   :  { %v2167_v58 = vpop.eup %2166  ;;  %v349_v3 = vpop.permute.xlu2 %348 }
 0xd13   :  { %v2169_v7 = vpop.eup %2168  ;;  %355 = vst.msk [vmem:[#allocation2] sm:$0x80] %vm354_vm9, %v349_v3  ;;  %842 = vrot.lane.b32.xlu0 %v2167_v58, %s2324_s19 }
 0xd14   :  { %844 = vrot.lane.b32.xlu1 %v2169_v7, %s2324_s19 }
 0xd1a   :  { %v1069_v28 = vld [vmem:[#allocation2] sm:$0xff] }
 0xd1b   :  { %2046 = vmatmul.msk.f32.vlgmr.msrb.gmra.mxu3 %vm174_vm7, %v1069_v28 }
 0xd85   :  { %v843_v2 = vpop.permute.xlu0 %842 }
 0xd86   :  { %v845_v29 = vpop.permute.xlu1 %844  ;;  %v2692_v30 = vmul.f32 %v843_v2, %v790_v43 }
 0xd87   :  { %v2694_v31 = vmul.f32 %v845_v29, %v805_v60 }
 0xd88   :  { %v863_v32 = vrot.slane %v2692_v30, 3 }
 0xd89   :  { %v864_v33 = vrot.slane %v2694_v31, 3 }
 0xd8b   :  { %v865_v34 = vsel %vm862_vm10, %v863_v32, %v864_v33 }
 0xd8c   :  { %866 = vrot.lane.b32.xlu0 %v865_v34, %s2325_s20 }
 0xd9e   :  { %v1126_v56 = vpop.f32.mrf.mxu3 }
 0xdfe   :  { %v867_v13 = vpop.permute.xlu0 %866 }
 0xdff   :  { %2041 = vmatmul.msk.f32.vlgmr.msrb.gmra.mxu1 %vm174_vm7, %v867_v13 }
 0xe00   :  { %1333 = vmatpush.msrb.mxu1 %v2713_v40 }
 0xe02   :  { %1334 = vmatpush.msrb.mxu1 %v2718_v42 }
 0xe04   :  { %1335 = vmatpush.msrb.mxu1 %v2725_v8 }
 0xe06   :  { %1336 = vmatpush.msrb.mxu1 %v2732_v10 }
 0xe07   :  { %1163 = vmatmul.f32.vlgmr.msra.gmra.mxu1 %v2323_v11  ;;  %v2756_v11 = vld [vmem:[%s3052_s8] ss:$0 sm:$0xff] }
 0xe08   :  { %1563 = vmatpush.msra.mxu1 %v2713_v40  ;;  %v2761_v57 = vadd.f32 %v2756_v11, %v1126_v56 }
 0xe0a   :  { %1564 = vmatpush.msra.mxu1 %v2718_v42 }
 0xe0c   :  { %1565 = vmatpush.msra.mxu1 %v2725_v8 }
 0xe0e   :  { %1566 = vmatpush.msra.mxu1 %v2732_v10 }
 0xe7c   :  { %v887_v39 = vpop.f32.mrf.mxu1 }
 0xe7d   :  { %v891_v52 = vrot.slane %v887_v39, 6 }
 0xe7f   :  { %v893_v41 = vadd.f32 %v891_v52, %v2655_v27  ;;  %v894_v43 = vadd.f32 %v891_v52, %v2751_v49 }
 0xe81   :  { %2170 = vtanh.f32 %v893_v41  ;;  %v2043_v27 = vmul.f32 -1.442695, %v894_v43  ;;  %v2042_v9 = vmul.f32 -1.442695, %v893_v41 }
 0xe82   :  { %2172 = vtanh.f32 %v894_v43 }
 0xe84   :  { %v1164_v59 = vpop.f32.mrf.mxu1 }
 0xe85   :  { %v1167_v62 = vadd.f32 %v1164_v59, %v2761_v57 }
 0xe87   :  { %v2171_v63 = vpop.eup %2170  ;;  %2174 = vtanh.f32 %v1167_v62  ;;  %v2053_v12 = vmul.f32 -1.442695, %v1167_v62 }
 0xe88   :  { %v2173_v0 = vpop.eup %2172  ;;  %946 = vrot.lane.b32.xlu1 %v2171_v63, %s2324_s19  ;;  %2176 = vpow2.f32 %v2043_v27 }
 0xe89   :  { %948 = vrot.lane.b32.xlu2 %v2173_v0, %s2324_s19 }
 0xe8d   :  { %v2175_v6 = vpop.eup %2174 }
 0xe8e   :  { %1190 = vrot.lane.b32.xlu0 %v2175_v6, %s2324_s19  ;;  %v2177_v1 = vpop.eup %2176 }
 0xe8f   :  { %v902_v4 = vadd.f32 1.0, %v2177_v1 }
 0xe91   :  { %2178 = vrcp.f32 %v902_v4  ;;  %v929_v61 = vand.u32 2147483648, %v902_v4  ;;  %vm923_vm12 = vweird.f32 %v902_v4  ;;  %v927_v21 = vand.u32 2147483647, %v902_v4 }
 0xe92   :  { %2180 = vpow2.f32 %v2042_v9 }
 0xe93   :  { %2182 = vpow2.f32 %v2053_v12  ;;  %v930_v58 = vor.u32 1.1754944e-38, %v929_v61  ;;  %vm928_vm15 = vcmp.eq.f32.partialorder %v927_v21, 8.507059e+37 }
 0xe97   :  { %v2179_v5 = vpop.eup %2178 }
 0xe98   :  { %v919_v60 = vmul.f32 %v2179_v5, %v902_v4  ;;  %v2181_v51 = vpop.eup %2180  ;;  %vm924_vm1 = vweird.f32 %v2179_v5 }
 0xe99   :  { %v901_v19 = vadd.f32 1.0, %v2181_v51  ;;  %v2183_v20 = vpop.eup %2182  ;;  %vm925_vm14 = vmor %vm923_vm12, %vm924_vm1 }
 0xe9a   :  { %v920_v54 = vsub.f32 1.0, %v919_v60  ;;  %v1171_v22 = vadd.f32 1.0, %v2183_v20 }
 0xe9b   :  { %2184 = vrcp.f32 %v901_v19  ;;  %v914_v37 = vand.u32 2147483648, %v901_v19  ;;  %vm908_vm5 = vweird.f32 %v901_v19  ;;  %v912_v17 = vand.u32 2147483647, %v901_v19 }
 0xe9c   :  { %v921_v18 = vmul.f32 %v2179_v5, %v920_v54  ;;  %2186 = vrcp.f32 %v1171_v22  ;;  %v1183_v41 = vand.u32 2147483648, %v1171_v22  ;;  %vm1177_vm1 = vweird.f32 %v1171_v22 }
 0xe9d   :  { %v915_v44 = vor.u32 1.1754944e-38, %v914_v37  ;;  %vm913_vm8 = vcmp.eq.f32.partialorder %v912_v17, 8.507059e+37  ;;  %v1181_v56 = vand.u32 2147483647, %v1171_v22 }
 0xe9e   :  { %v922_v46 = vadd.f32 %v2179_v5, %v921_v18  ;;  %v1184_v62 = vor.u32 1.1754944e-38, %v1183_v41 }
 0xea0   :  { %v926_v24 = vsel %vm925_vm14, %v2179_v5, %v922_v46  ;;  %vm1182_vm14 = vcmp.eq.f32.partialorder %v1181_v56, 8.507059e+37 }
 0xea1   :  { %v2767_v7 = vsel %vm928_vm15, %v930_v58, %v926_v24  ;;  %v2185_v28 = vpop.eup %2184  ;;  %vm481_vm15 = vcmask 261126  }
 0xea2   :  { %v904_v29 = vmul.f32 %v2185_v28, %v901_v19  ;;  %v2187_v32 = vpop.eup %2186  ;;  %vm909_vm4 = vweird.f32 %v2185_v28  ;;  %v943_v27 = vmul.f32 %v938_v25, %v2767_v7 }
 0xea3   :  { %v1173_v34 = vmul.f32 %v2187_v32, %v1171_v22  ;;  %vm910_vm6 = vmor %vm908_vm5, %vm909_vm4  ;;  %vm1178_vm9 = vweird.f32 %v2187_v32  ;;  %vm988_vm4 = vcmask 1045504   ;;  %vm356_vm5 = vcmask 259072  }
 0xea4   :  { %v905_v33 = vsub.f32 1.0, %v904_v29  ;;  %vm1179_vm12 = vmor %vm1177_vm1, %vm1178_vm9 }
 0xea5   :  { %v1174_v16 = vsub.f32 1.0, %v1173_v34 }
 0xea6   :  { %v906_v35 = vmul.f32 %v2185_v28, %v905_v33 }
 0xea7   :  { %v1175_v38 = vmul.f32 %v2187_v32, %v1174_v16 }
 0xea8   :  { %v907_v36 = vadd.f32 %v2185_v28, %v906_v35 }
 0xea9   :  { %v1176_v45 = vadd.f32 %v2187_v32, %v1175_v38 }
 0xeaa   :  { %v911_v13 = vsel %vm910_vm6, %v2185_v28, %v907_v36 }
 0xeab   :  { %v916_v52 = vsel %vm913_vm8, %v915_v44, %v911_v13  ;;  %v1180_v59 = vsel %vm1179_vm12, %v2187_v32, %v1176_v45 }
 0xeac   :  { %v1185_v0 = vsel %vm1182_vm14, %v1184_v62, %v1180_v59  ;;  %v942_v9 = vmul.f32 %v2687_v26, %v916_v52 }
 0xead   :  { %v1188_v18 = vmul.f32 0.0, %v1185_v0 }
 0xee3   :  { %v949_v3 = vpop.permute.xlu2 %948 }
 0xee4   :  { %v953_v2 = vmul.f32 %v949_v3, %v2767_v7 }
 0xee6   :  { %958 = vrot.lane.b32.xlu2 %v953_v2, %s2325_s20 }
 0xefa   :  { %v947_v39 = vpop.permute.xlu1 %946 }
 0xefb   :  { %v952_v43 = vmul.f32 %v947_v39, %v916_v52 }
 0xefd   :  { %956 = vrot.lane.b32.xlu1 %v952_v43, %s2325_s20 }
 0xf00   :  { %v1191_v63 = vpop.permute.xlu0 %1190 }
 0xf01   :  { %v1193_v6 = vmul.f32 %v1191_v63, %v1185_v0 }
 0xf03   :  { %1195 = vrot.lane.b32.xlu0 %v1193_v6, %s2325_s20 }
 0xf40   :  { %v959_v1 = vpop.permute.xlu2 %958 }
 0xf41   :  { %v963_v4 = vadd.f32 %v959_v1, %v943_v27 }
 0xf43   :  { %2188 = vtanh.f32 %v963_v4  ;;  %v1043_v54 = vrot.slane %v963_v4, 1 }
 0xf49   :  { %v2189_v5 = vpop.eup %2188 }
 0xf4a   :  { %970 = vrot.lane.b32.xlu2 %v2189_v5, %s2324_s19 }
 0xf52   :  { %475 = vrot.lane.b32.xlu2 %v2551_v53, %s2325_s20 }
 0xf6f   :  { %v957_v60 = vpop.permute.xlu1 %956 }
 0xf70   :  { %v962_v12 = vadd.f32 %v957_v60, %v942_v9 }
 0xf72   :  { %2190 = vtanh.f32 %v962_v12  ;;  %v1042_v51 = vrot.slane %v962_v12, 1 }
 0xf74   :  { %v2781_v23 = vsel %vm433_vm2, %v1042_v51, %v1043_v54 }
 0xf75   :  { %v1196_v25 = vpop.permute.xlu0 %1195 }
 0xf76   :  { %v2783_v19 = vadd.f32 %v1196_v25, %v1188_v18 }
 0xf78   :  { %v2191_v46 = vpop.eup %2190  ;;  %2192 = vtanh.f32 %v2783_v19 }
 0xf79   :  { %968 = vrot.lane.b32.xlu1 %v2191_v46, %s2324_s19 }
 0xf7e   :  { %v2193_v53 = vpop.eup %2192 }
 0xf7f   :  { %1201 = vrot.lane.b32.xlu0 %v2193_v53, %s2324_s19 }
 0xf81   :  { %350 = vrot.lane.b32.xlu1 %v2507_v48, %s2325_s20 }
 0xfa4   :  { %v971_v26 = vpop.permute.xlu2 %970 }
 0xfa5   :  { %v2791_v61 = vmul.f32 %v971_v26, %v2767_v7 }
 0xfa7   :  { %v990_v24 = vrot.slane %v2791_v61, 2 }
 0xfac   :  { %v476_v20 = vpop.permute.xlu2 %475 }
 0xfad   :  { %482 = vst.msk [vmem:[#allocation2 + $0x8] sm:$0xc0] %vm481_vm15, %v476_v20 }
 0xfeb   :  { %v969_v21 = vpop.permute.xlu1 %968 }
 0xfec   :  { %v2793_v22 = vmul.f32 %v969_v21, %v916_v52 }
 0xfee   :  { %v989_v58 = vrot.slane %v2793_v22, 2 }
 0xff0   :  { %v991_v3 = vsel %vm988_vm4, %v989_v58, %v990_v24  ;;  %v1276_v58 = vrot.slane %v2783_v19, 1 }
 0xff1   :  { %992 = vrot.lane.b32.xlu0 %v991_v3, %s2325_s20  ;;  %v1202_v48 = vpop.permute.xlu0 %1201 }
 0xff2   :  { %v1204_v28 = vmul.f32 %v1202_v48, %v1185_v0 }
 0xff3   :  { %v351_v2 = vpop.permute.xlu1 %350 }
 0xff4   :  { %357 = vst.msk [vmem:[#allocation2 + $0x8] sm:$0x3f] %vm356_vm5, %v351_v2  ;;  %1206 = vrot.lane.b32.xlu1 %v1204_v28, %s2325_s20 }
 0xffb   :  { %v1070_v7 = vld [vmem:[#allocation2 + $0x8] sm:$0xff] }
 0xffc   :  { %2047 = vmatmul.msk.f32.gmra.mxu3 %vm174_vm7, %v1070_v7 }
0x1063   :  { %v993_v29 = vpop.permute.xlu0 %992 }
0x1064   :  { %2044 = vmatmul.msk.f32.vlgmr.msra.gmra.mxu2 %vm174_vm7, %v993_v29 }
0x1065   :  { %1448 = vmatpush.msra.mxu2 %v2713_v40 }
0x1066   :  { %v1207_v32 = vpop.permute.xlu1 %1206 }
0x1067   :  { %1449 = vmatpush.msra.mxu2 %v2718_v42 }
0x1069   :  { %1450 = vmatpush.msra.mxu2 %v2725_v8 }
0x106b   :  { %1451 = vmatpush.msra.mxu2 %v2732_v10 }
0x106c   :  { %2054 = vmatmul.msk.f32.vlgmr.msrb.gmra.mxu2 %vm174_vm7, %v1207_v32 }
0x106d   :  { %1678 = vmatpush.msrb.mxu2 %v2713_v40 }
0x106f   :  { %1679 = vmatpush.msrb.mxu2 %v2718_v42 }
0x1071   :  { %1680 = vmatpush.msrb.mxu2 %v2725_v8 }
0x1073   :  { %1681 = vmatpush.msrb.mxu2 %v2732_v10 }
0x107f   :  { %v1129_v34 = vpop.f32.mrf.mxu3 }
0x1080   :  { %v2814_v16 = vadd.f32 %v2756_v11, %v1129_v34 }
0x10e7   :  { %v2811_v33 = vpop.f32.mrf.mxu2 }
0x10ef   :  { %v1227_v35 = vpop.f32.mrf.mxu2 }
0x10f0   :  { %v1231_v36 = vrot.slane %v1227_v35, 1 }
0x10f2   :  { %v1233_v37 = vadd.f32 %v1231_v36, %v2761_v57  ;;  %v1234_v17 = vadd.f32 %v1231_v36, %v2814_v16 }
0x10f4   :  { %2194 = vtanh.f32 %v1233_v37  ;;  %v2055_v44 = vmul.f32 -1.442695, %v1233_v37  ;;  %v2056_v41 = vmul.f32 -1.442695, %v1234_v17 }
0x10f5   :  { %2196 = vtanh.f32 %v1234_v17 }
0x10f6   :  { %2198 = vpow2.f32 %v2055_v44 }
0x10fa   :  { %v2195_v38 = vpop.eup %2194 }
0x10fb   :  { %v2197_v13 = vpop.eup %2196  ;;  %1282 = vrot.lane.b32.xlu2 %v2195_v38, %s2324_s19 }
0x10fc   :  { %1284 = vrot.lane.b32.xlu0 %v2197_v13, %s2324_s19  ;;  %v2199_v45 = vpop.eup %2198 }
0x10fd   :  { %v1241_v39 = vadd.f32 1.0, %v2199_v45 }
0x10ff   :  { %2200 = vrcp.f32 %v1241_v39  ;;  %v1254_v0 = vand.u32 2147483648, %v1241_v39  ;;  %vm1248_vm8 = vweird.f32 %v1241_v39  ;;  %v1252_v6 = vand.u32 2147483647, %v1241_v39 }
0x1100   :  { %2202 = vpow2.f32 %v2056_v41 }
0x1101   :  { %v1255_v1 = vor.u32 1.1754944e-38, %v1254_v0  ;;  %vm1253_vm1 = vcmp.eq.f32.partialorder %v1252_v6, 8.507059e+37 }
0x1105   :  { %v2201_v52 = vpop.eup %2200 }
0x1106   :  { %v1244_v43 = vmul.f32 %v2201_v52, %v1241_v39  ;;  %v2203_v59 = vpop.eup %2202  ;;  %vm1249_vm6 = vweird.f32 %v2201_v52 }
0x1107   :  { %v1242_v62 = vadd.f32 1.0, %v2203_v59  ;;  %vm1250_vm9 = vmor %vm1248_vm8, %vm1249_vm6  ;;  %vm483_vm6 = vcmask 258048   ;;  %vm607_vm8 = vcmask 261125  }
0x1108   :  { %v1245_v57 = vsub.f32 1.0, %v1244_v43 }
0x1109   :  { %2204 = vrcp.f32 %v1242_v62  ;;  %v1269_v25 = vand.u32 2147483648, %v1242_v62  ;;  %vm1263_vm14 = vweird.f32 %v1242_v62  ;;  %v1267_v46 = vand.u32 2147483647, %v1242_v62 }
0x110a   :  { %v1246_v56 = vmul.f32 %v2201_v52, %v1245_v57 }
0x110b   :  { %v1270_v26 = vor.u32 1.1754944e-38, %v1269_v25  ;;  %vm1268_vm5 = vcmp.eq.f32.partialorder %v1267_v46, 8.507059e+37 }
0x110c   :  { %v1247_v63 = vadd.f32 %v2201_v52, %v1246_v56 }
0x110e   :  { %v1251_v27 = vsel %vm1250_vm9, %v2201_v52, %v1247_v63 }
0x110f   :  { %v1256_v5 = vsel %vm1253_vm1, %v1255_v1, %v1251_v27  ;;  %v2205_v60 = vpop.eup %2204 }
0x1110   :  { %v1259_v12 = vmul.f32 %v2205_v60, %v1242_v62  ;;  %vm1264_vm12 = vweird.f32 %v2205_v60  ;;  %v1278_v3 = vmul.f32 %v1276_v58, %v1256_v5 }
0x1111   :  { %vm1265_vm15 = vmor %vm1263_vm14, %vm1264_vm12 }
0x1112   :  { %v1260_v54 = vsub.f32 1.0, %v1259_v12 }
0x1114   :  { %v1261_v51 = vmul.f32 %v2205_v60, %v1260_v54 }
0x1116   :  { %v1262_v18 = vadd.f32 %v2205_v60, %v1261_v51 }
0x1118   :  { %v1266_v53 = vsel %vm1265_vm15, %v2205_v60, %v1262_v18 }
0x1119   :  { %v1271_v21 = vsel %vm1268_vm5, %v1270_v26, %v1266_v53 }
0x111a   :  { %v1279_v48 = vmul.f32 %v1276_v58, %v1271_v21 }
0x1155   :  { %v1283_v4 = vpop.permute.xlu2 %1282 }
0x1156   :  { %v1288_v9 = vmul.f32 %v1283_v4, %v1256_v5 }
0x1158   :  { %1292 = vrot.lane.b32.xlu1 %v1288_v9, %s2325_s20 }
0x116e   :  { %v1285_v20 = vpop.permute.xlu0 %1284 }
0x116f   :  { %v1289_v24 = vmul.f32 %v1285_v20, %v1271_v21 }
0x1171   :  { %1294 = vrot.lane.b32.xlu2 %v1289_v24, %s2325_s20 }
0x1179   :  { %477 = vrot.lane.b32.xlu2 %v2553_v55, %s2325_s20 }
0x11ca   :  { %v1293_v28 = vpop.permute.xlu1 %1292 }
0x11cb   :  { %v1295_v2 = vpop.permute.xlu2 %1294  ;;  %v1298_v7 = vadd.f32 %v1293_v28, %v1278_v3 }
0x11cc   :  { %v2825_v29 = vadd.f32 %v1295_v2, %v1279_v48 }
0x11cd   :  { %2206 = vtanh.f32 %v1298_v7  ;;  %v1388_v32 = vrot.slane %v1298_v7, 1 }
0x11ce   :  { %2208 = vtanh.f32 %v2825_v29  ;;  %v1389_v34 = vrot.slane %v2825_v29, 1 }
0x11d0   :  { %v2832_v35 = vsel %vm433_vm2, %v1388_v32, %v1389_v34 }
0x11d3   :  { %v2207_v55 = vpop.eup %2206  ;;  %v478_v19 = vpop.permute.xlu2 %477 }
0x11d4   :  { %v2209_v36 = vpop.eup %2208  ;;  %484 = vst.msk [vmem:[#allocation2 + $0x10] sm:$0x1f] %vm483_vm6, %v478_v19  ;;  %1304 = vrot.lane.b32.xlu0 %v2207_v55, %s2324_s19 }
0x11d5   :  { %1306 = vrot.lane.b32.xlu1 %v2209_v36, %s2324_s19 }
0x11dc   :  { %601 = vrot.lane.b32.xlu0 %v2593_v47, %s2325_s20 }
0x1246   :  { %v1305_v37 = vpop.permute.xlu0 %1304 }
0x1247   :  { %v1307_v17 = vpop.permute.xlu1 %1306  ;;  %v1310_v38 = vmul.f32 %v1305_v37, %v1256_v5 }
0x1248   :  { %v1311_v13 = vmul.f32 %v1307_v17, %v1271_v21 }
0x1249   :  { %v1314_v44 = vrot.slane %v1310_v38, 7 }
0x124a   :  { %v1315_v45 = vrot.slane %v1311_v13, 7 }
0x124c   :  { %v1316_v39 = vsel %vm358_vm3, %v1314_v44, %v1315_v45 }
0x124d   :  { %1317 = vrot.lane.b32.xlu1 %v1316_v39, %s2325_s20 }
0x124e   :  { %v602_v52 = vpop.permute.xlu0 %601 }
0x124f   :  { %608 = vst.msk [vmem:[#allocation2 + $0x10] sm:$0xe0] %vm607_vm8, %v602_v52  ;;  %vm609_vm8 = vcmask 257024  }
0x1256   :  { %v1071_v41 = vld [vmem:[#allocation2 + $0x10] sm:$0xff] }
0x1257   :  { %2048 = vmatmul.msk.f32.gmra.mxu3 %vm174_vm7, %v1071_v41 }
0x12bf   :  { %v1318_v43 = vpop.permute.xlu1 %1317 }
0x12c0   :  { %2057 = vmatmul.msk.f32.vlgmr.msrb.gmra.mxu1 %vm174_vm7, %v1318_v43 }
0x12c1   :  { %1793 = vmatpush.msrb.mxu1 %v2713_v40 }
0x12c3   :  { %1794 = vmatpush.msrb.mxu1 %v2718_v42 }
0x12c5   :  { %1795 = vmatpush.msrb.mxu1 %v2725_v8 }
0x12c7   :  { %1796 = vmatpush.msrb.mxu1 %v2732_v10 }
0x12da   :  { %v1132_v47 = vpop.f32.mrf.mxu3 }
0x12db   :  { %v2847_v56 = vadd.f32 %v2756_v11, %v1132_v47 }
0x133d   :  { %v1338_v57 = vpop.f32.mrf.mxu1 }
0x133e   :  { %v1342_v59 = vrot.slane %v1338_v57, 2 }
0x1340   :  { %v1344_v62 = vadd.f32 %v1342_v59, %v2814_v16  ;;  %v1345_v63 = vadd.f32 %v1342_v59, %v2847_v56 }
0x1342   :  { %2210 = vtanh.f32 %v1344_v62  ;;  %v2058_v27 = vmul.f32 -1.442695, %v1344_v62  ;;  %v2059_v9 = vmul.f32 -1.442695, %v1345_v63 }
0x1343   :  { %2212 = vtanh.f32 %v1345_v63 }
0x1344   :  { %2214 = vpow2.f32 %v2058_v27 }
0x1348   :  { %v2211_v0 = vpop.eup %2210 }
0x1349   :  { %v2213_v6 = vpop.eup %2212  ;;  %1397 = vrot.lane.b32.xlu2 %v2211_v0, %s2324_s19 }
0x134a   :  { %1399 = vrot.lane.b32.xlu0 %v2213_v6, %s2324_s19  ;;  %v2215_v1 = vpop.eup %2214 }
0x134b   :  { %v1352_v4 = vadd.f32 1.0, %v2215_v1 }
0x134d   :  { %2216 = vrcp.f32 %v1352_v4  ;;  %v1365_v25 = vand.u32 2147483648, %v1352_v4  ;;  %vm1359_vm9 = vweird.f32 %v1352_v4  ;;  %v1363_v46 = vand.u32 2147483647, %v1352_v4 }
0x134e   :  { %2218 = vpow2.f32 %v2059_v9 }
0x134f   :  { %v1366_v26 = vor.u32 1.1754944e-38, %v1365_v25  ;;  %vm1364_vm12 = vcmp.eq.f32.partialorder %v1363_v46, 8.507059e+37 }
0x1353   :  { %v2217_v5 = vpop.eup %2216 }
0x1354   :  { %v1355_v60 = vmul.f32 %v2217_v5, %v1352_v4  ;;  %v2219_v54 = vpop.eup %2218  ;;  %vm1360_vm3 = vweird.f32 %v2217_v5 }
0x1355   :  { %v1353_v51 = vadd.f32 1.0, %v2219_v54  ;;  %vm1361_vm1 = vmor %vm1359_vm9, %vm1360_vm3  ;;  %vm733_vm3 = vcmask 261124  }
0x1356   :  { %v1356_v16 = vsub.f32 1.0, %v1355_v60 }
0x1357   :  { %2220 = vrcp.f32 %v1353_v51  ;;  %v1380_v7 = vand.u32 2147483648, %v1353_v51  ;;  %vm1374_vm15 = vweird.f32 %v1353_v51  ;;  %v1378_v32 = vand.u32 2147483647, %v1353_v51 }
0x1358   :  { %v1357_v12 = vmul.f32 %v2217_v5, %v1356_v16 }
0x1359   :  { %v1381_v19 = vor.u32 1.1754944e-38, %v1380_v7  ;;  %vm1379_vm6 = vcmp.eq.f32.partialorder %v1378_v32, 8.507059e+37 }
0x135a   :  { %v1358_v18 = vadd.f32 %v2217_v5, %v1357_v12 }
0x135c   :  { %v1362_v53 = vsel %vm1361_vm1, %v2217_v5, %v1358_v18 }
0x135d   :  { %v1367_v21 = vsel %vm1364_vm12, %v1366_v26, %v1362_v53  ;;  %v2221_v58 = vpop.eup %2220 }
0x135e   :  { %v1370_v3 = vmul.f32 %v2221_v58, %v1353_v51  ;;  %vm1375_vm14 = vweird.f32 %v2221_v58  ;;  %v1393_v38 = vmul.f32 %v2832_v35, %v1367_v21 }
0x135f   :  { %vm1376_vm5 = vmor %vm1374_vm15, %vm1375_vm14 }
0x1360   :  { %v1371_v48 = vsub.f32 1.0, %v1370_v3 }
0x1362   :  { %v1372_v28 = vmul.f32 %v2221_v58, %v1371_v48 }
0x1364   :  { %v1373_v2 = vadd.f32 %v2221_v58, %v1372_v28 }
0x1366   :  { %v1377_v55 = vsel %vm1376_vm5, %v2221_v58, %v1373_v2 }
0x1367   :  { %v1382_v37 = vsel %vm1379_vm6, %v1381_v19, %v1377_v55 }
0x1368   :  { %v1394_v44 = vmul.f32 %v1389_v34, %v1382_v37 }
0x13a3   :  { %v1398_v20 = vpop.permute.xlu2 %1397 }
0x13a4   :  { %v1403_v24 = vmul.f32 %v1398_v20, %v1367_v21 }
0x13a6   :  { %1407 = vrot.lane.b32.xlu1 %v1403_v24, %s2325_s20 }
0x13bc   :  { %v1400_v36 = vpop.permute.xlu0 %1399 }
0x13bd   :  { %v1404_v17 = vmul.f32 %v1400_v36, %v1382_v37 }
0x13bf   :  { %1409 = vrot.lane.b32.xlu2 %v1404_v17, %s2325_s20 }
0x13c7   :  { %603 = vrot.lane.b32.xlu2 %v2595_v50, %s2325_s20 }
0x1418   :  { %v1408_v13 = vpop.permute.xlu1 %1407 }
0x1419   :  { %v1413_v45 = vadd.f32 %v1408_v13, %v1393_v38  ;;  %v1410_v39 = vpop.permute.xlu2 %1409 }
0x141a   :  { %v2860_v52 = vadd.f32 %v1410_v39, %v1394_v44 }
0x141b   :  { %2222 = vtanh.f32 %v1413_v45  ;;  %v1503_v41 = vrot.slane %v1413_v45, 1 }
0x141c   :  { %2224 = vtanh.f32 %v2860_v52  ;;  %v1504_v43 = vrot.slane %v2860_v52, 1 }
0x141e   :  { %v2867_v50 = vsel %vm433_vm2, %v1503_v41, %v1504_v43 }
0x1421   :  { %v2223_v35 = vpop.eup %2222  ;;  %v604_v47 = vpop.permute.xlu2 %603 }
0x1422   :  { %v2225_v29 = vpop.eup %2224  ;;  %610 = vst.msk [vmem:[#allocation2 + $0x18] sm:$0xf] %vm609_vm8, %v604_v47  ;;  %1419 = vrot.lane.b32.xlu0 %v2223_v35, %s2324_s19  ;;  %vm735_vm8 = vcmask 256000  }
0x1423   :  { %1421 = vrot.lane.b32.xlu1 %v2225_v29, %s2324_s19 }
0x142a   :  { %727 = vrot.lane.b32.xlu0 %v2635_v14, %s2325_s20 }
0x1494   :  { %v1420_v34 = vpop.permute.xlu0 %1419 }
0x1495   :  { %v1425_v57 = vmul.f32 %v1420_v34, %v1367_v21  ;;  %v1422_v59 = vpop.permute.xlu1 %1421 }
0x1496   :  { %v1426_v62 = vmul.f32 %v1422_v59, %v1382_v37 }
0x1497   :  { %v1429_v63 = vrot.slane %v1425_v57, 6 }
0x1498   :  { %v1430_v0 = vrot.slane %v1426_v62, 6 }
0x149a   :  { %v1431_v6 = vsel %vm485_vm13, %v1429_v63, %v1430_v0 }
0x149b   :  { %1432 = vrot.lane.b32.xlu1 %v1431_v6, %s2325_s20 }
0x149c   :  { %v728_v27 = vpop.permute.xlu0 %727 }
0x149d   :  { %734 = vst.msk [vmem:[#allocation2 + $0x18] sm:$0xf0] %vm733_vm3, %v728_v27  ;;  %vm858_vm3 = vcmask 261123  }
0x14a4   :  { %v1072_v1 = vld [vmem:[#allocation2 + $0x18] sm:$0xff] }
0x14a5   :  { %2049 = vmatmul.msk.f32.gmra.mxu3 %vm174_vm7, %v1072_v1 }
0x150d   :  { %v1433_v4 = vpop.permute.xlu1 %1432 }
0x150e   :  { %2060 = vmatmul.msk.f32.vlgmr.msra.gmra.mxu2 %vm174_vm7, %v1433_v4 }
0x150f   :  { %1916 = vmatpush.msra.mxu2 %v2713_v40 }
0x1511   :  { %1917 = vmatpush.msra.mxu2 %v2718_v42 }
0x1513   :  { %1918 = vmatpush.msra.mxu2 %v2725_v8 }
0x1515   :  { %1919 = vmatpush.msra.mxu2 %v2732_v10 }
0x1528   :  { %v1135_v14 = vpop.f32.mrf.mxu3 }
0x1529   :  { %v2882_v9 = vadd.f32 %v2756_v11, %v1135_v14 }
0x1591   :  { %v1453_v5 = vpop.f32.mrf.mxu2 }
0x1592   :  { %v1457_v60 = vrot.slane %v1453_v5, 3 }
0x1594   :  { %v1459_v16 = vadd.f32 %v1457_v60, %v2847_v56  ;;  %v1460_v12 = vadd.f32 %v1457_v60, %v2882_v9 }
0x1596   :  { %2226 = vtanh.f32 %v1459_v16  ;;  %v2061_v42 = vmul.f32 -1.442695, %v1459_v16  ;;  %v2062_v18 = vmul.f32 -1.442695, %v1460_v12 }
0x1597   :  { %2228 = vtanh.f32 %v1460_v12 }
0x1598   :  { %2230 = vpow2.f32 %v2061_v42 }
0x159c   :  { %v2227_v54 = vpop.eup %2226 }
0x159d   :  { %v2229_v40 = vpop.eup %2228  ;;  %1512 = vrot.lane.b32.xlu2 %v2227_v54, %s2324_s19 }
0x159e   :  { %1514 = vrot.lane.b32.xlu0 %v2229_v40, %s2324_s19  ;;  %v2231_v8 = vpop.eup %2230 }
0x159f   :  { %v1467_v10 = vadd.f32 1.0, %v2231_v8 }
0x15a1   :  { %2232 = vrcp.f32 %v1467_v10  ;;  %v1480_v21 = vand.u32 2147483648, %v1467_v10  ;;  %vm1474_vm9 = vweird.f32 %v1467_v10  ;;  %v1478_v24 = vand.u32 2147483647, %v1467_v10 }
0x15a2   :  { %2234 = vpow2.f32 %v2062_v18 }
0x15a3   :  { %v1481_v3 = vor.u32 1.1754944e-38, %v1480_v21  ;;  %vm1479_vm12 = vcmp.eq.f32.partialorder %v1478_v24, 8.507059e+37 }
0x15a7   :  { %v2233_v51 = vpop.eup %2232 }
0x15a8   :  { %v1470_v25 = vmul.f32 %v2233_v51, %v1467_v10  ;;  %v2235_v53 = vpop.eup %2234  ;;  %vm1475_vm13 = vweird.f32 %v2233_v51 }
0x15a9   :  { %v1468_v26 = vadd.f32 1.0, %v2235_v53  ;;  %vm1476_vm1 = vmor %vm1474_vm9, %vm1475_vm13 }
0x15aa   :  { %v1471_v56 = vsub.f32 1.0, %v1470_v25 }
0x15ab   :  { %2236 = vrcp.f32 %v1468_v26  ;;  %v1495_v37 = vand.u32 2147483648, %v1468_v26  ;;  %vm1489_vm15 = vweird.f32 %v1468_v26  ;;  %v1493_v17 = vand.u32 2147483647, %v1468_v26 }
0x15ac   :  { %v1472_v46 = vmul.f32 %v2233_v51, %v1471_v56 }
0x15ad   :  { %v1496_v13 = vor.u32 1.1754944e-38, %v1495_v37  ;;  %vm1494_vm6 = vcmp.eq.f32.partialorder %v1493_v17, 8.507059e+37 }
0x15ae   :  { %v1473_v20 = vadd.f32 %v2233_v51, %v1472_v46 }
0x15b0   :  { %v1477_v58 = vsel %vm1476_vm1, %v2233_v51, %v1473_v20 }
0x15b1   :  { %v1482_v28 = vsel %vm1479_vm12, %v1481_v3, %v1477_v58  ;;  %v2237_v7 = vpop.eup %2236 }
0x15b2   :  { %v1485_v32 = vmul.f32 %v2237_v7, %v1468_v26  ;;  %vm1490_vm14 = vweird.f32 %v2237_v7  ;;  %v1508_v41 = vmul.f32 %v2867_v50, %v1482_v28 }
0x15b3   :  { %vm1491_vm5 = vmor %vm1489_vm15, %vm1490_vm14 }
0x15b4   :  { %v1486_v55 = vsub.f32 1.0, %v1485_v32 }
0x15b6   :  { %v1487_v19 = vmul.f32 %v2237_v7, %v1486_v55 }
0x15b8   :  { %v1488_v36 = vadd.f32 %v2237_v7, %v1487_v19 }
0x15ba   :  { %v1492_v38 = vsel %vm1491_vm5, %v2237_v7, %v1488_v36 }
0x15bb   :  { %v1497_v45 = vsel %vm1494_vm6, %v1496_v13, %v1492_v38  ;;  %vm860_vm6 = vcmask 254976  }
0x15bc   :  { %v1509_v35 = vmul.f32 %v1504_v43, %v1497_v45 }
0x15f7   :  { %v1513_v48 = vpop.permute.xlu2 %1512 }
0x15f8   :  { %v1518_v2 = vmul.f32 %v1513_v48, %v1482_v28 }
0x15fa   :  { %1522 = vrot.lane.b32.xlu1 %v1518_v2, %s2325_s20 }
0x1610   :  { %v1515_v44 = vpop.permute.xlu0 %1514 }
0x1611   :  { %v1519_v39 = vmul.f32 %v1515_v44, %v1497_v45 }
0x1613   :  { %1524 = vrot.lane.b32.xlu2 %v1519_v39, %s2325_s20 }
0x161b   :  { %729 = vrot.lane.b32.xlu2 %v2637_v15, %s2325_s20 }
0x166c   :  { %v1523_v47 = vpop.permute.xlu1 %1522 }
0x166d   :  { %v1525_v29 = vpop.permute.xlu2 %1524  ;;  %v1528_v34 = vadd.f32 %v1523_v47, %v1508_v41  ;;  %v1017_v47 = vrot.slane %v2811_v33, 7 }
0x166e   :  { %v2895_v57 = vadd.f32 %v1525_v29, %v1509_v35 }
0x166f   :  { %2238 = vtanh.f32 %v1528_v34  ;;  %v1618_v59 = vrot.slane %v1528_v34, 1  ;;  %v1019_v29 = vadd.f32 %v1017_v47, %v2751_v49 }
0x1670   :  { %2240 = vtanh.f32 %v2895_v57  ;;  %v1619_v62 = vrot.slane %v2895_v57, 1 }
0x1672   :  { %v2902_v15 = vsel %vm433_vm2, %v1618_v59, %v1619_v62  ;;  %v2045_v59 = vmul.f32 -1.442695, %v1019_v29 }
0x1675   :  { %v2239_v50 = vpop.eup %2238  ;;  %v730_v52 = vpop.permute.xlu2 %729 }
0x1676   :  { %v2241_v43 = vpop.eup %2240  ;;  %736 = vst.msk [vmem:[#allocation2 + $0x20] sm:$0x7] %vm735_vm8, %v730_v52  ;;  %1534 = vrot.lane.b32.xlu0 %v2239_v50, %s2324_s19 }
0x1677   :  { %1536 = vrot.lane.b32.xlu1 %v2241_v43, %s2324_s19 }
0x167e   :  { %852 = vrot.lane.b32.xlu0 %v2692_v30, %s2325_s20 }
0x16e8   :  { %v1535_v63 = vpop.permute.xlu0 %1534 }
0x16e9   :  { %v1537_v0 = vpop.permute.xlu1 %1536  ;;  %v1540_v6 = vmul.f32 %v1535_v63, %v1482_v28 }
0x16ea   :  { %v1541_v27 = vmul.f32 %v1537_v0, %v1497_v45 }
0x16eb   :  { %v1544_v1 = vrot.slane %v1540_v6, 5 }
0x16ec   :  { %v1545_v4 = vrot.slane %v1541_v27, 5 }
0x16ee   :  { %v1546_v14 = vsel %vm611_vm11, %v1544_v1, %v1545_v4 }
0x16ef   :  { %1547 = vrot.lane.b32.xlu1 %v1546_v14, %s2325_s20 }
0x16f0   :  { %v853_v5 = vpop.permute.xlu0 %852 }
0x16f1   :  { %859 = vst.msk [vmem:[#allocation2 + $0x20] sm:$0xf8] %vm858_vm3, %v853_v5 }
0x16f8   :  { %v1073_v60 = vld [vmem:[#allocation2 + $0x20] sm:$0xff] }
0x16f9   :  { %2050 = vmatmul.msk.f32.gmra.mxu3 %vm174_vm7, %v1073_v60 }
0x1761   :  { %v1548_v16 = vpop.permute.xlu1 %1547 }
0x1762   :  { %2063 = vmatmul.msk.f32.vlgmr.msra.gmra.mxu1 %vm174_vm7, %v1548_v16 }
0x177c   :  { %v1138_v30 = vpop.f32.mrf.mxu3 }
0x177d   :  { %v2913_v54 = vadd.f32 %v2756_v11, %v1138_v30 }
0x17df   :  { %v1568_v12 = vpop.f32.mrf.mxu1 }
0x17e0   :  { %v1572_v40 = vrot.slane %v1568_v12, 4 }
0x17e2   :  { %v1574_v42 = vadd.f32 %v1572_v40, %v2882_v9  ;;  %v1575_v8 = vadd.f32 %v1572_v40, %v2913_v54 }
0x17e4   :  { %2242 = vtanh.f32 %v1574_v42  ;;  %v2064_v18 = vmul.f32 -1.442695, %v1574_v42  ;;  %v2065_v46 = vmul.f32 -1.442695, %v1575_v8 }
0x17e5   :  { %2244 = vtanh.f32 %v1575_v8 }
0x17e6   :  { %2246 = vpow2.f32 %v2064_v18 }
0x17ea   :  { %v2243_v10 = vpop.eup %2242 }
0x17eb   :  { %v2245_v51 = vpop.eup %2244  ;;  %1627 = vrot.lane.b32.xlu2 %v2243_v10, %s2324_s19 }
0x17ec   :  { %1629 = vrot.lane.b32.xlu0 %v2245_v51, %s2324_s19  ;;  %v2247_v25 = vpop.eup %2246 }
0x17ed   :  { %v1582_v56 = vadd.f32 1.0, %v2247_v25 }
0x17ef   :  { %2248 = vrcp.f32 %v1582_v56  ;;  %v1595_v58 = vand.u32 2147483648, %v1582_v56  ;;  %vm1589_vm13 = vweird.f32 %v1582_v56  ;;  %v1593_v3 = vand.u32 2147483647, %v1582_v56 }
0x17f0   :  { %2250 = vpow2.f32 %v2065_v46 }
0x17f1   :  { %v1596_v28 = vor.u32 1.1754944e-38, %v1595_v58  ;;  %vm1594_vm1 = vcmp.eq.f32.partialorder %v1593_v3, 8.507059e+37 }
0x17f5   :  { %v2249_v11 = vpop.eup %2248 }
0x17f6   :  { %v1585_v53 = vmul.f32 %v2249_v11, %v1582_v56  ;;  %v2251_v20 = vpop.eup %2250  ;;  %vm1590_vm11 = vweird.f32 %v2249_v11 }
0x17f7   :  { %v1583_v21 = vadd.f32 1.0, %v2251_v20  ;;  %vm1591_vm9 = vmor %vm1589_vm13, %vm1590_vm11 }
0x17f8   :  { %v1586_v9 = vsub.f32 1.0, %v1585_v53 }
0x17f9   :  { %2252 = vrcp.f32 %v1583_v21  ;;  %v1610_v38 = vand.u32 2147483648, %v1583_v21  ;;  %vm1604_vm14 = vweird.f32 %v1583_v21  ;;  %v1608_v13 = vand.u32 2147483647, %v1583_v21 }
0x17fa   :  { %v1587_v26 = vmul.f32 %v2249_v11, %v1586_v9  ;;  %2254 = vtanh.f32 %v1019_v29 }
0x17fb   :  { %v1611_v45 = vor.u32 1.1754944e-38, %v1610_v38  ;;  %vm1609_vm5 = vcmp.eq.f32.partialorder %v1608_v13, 8.507059e+37  ;;  %2256 = vpow2.f32 %v2045_v59 }
0x17fc   :  { %v1588_v24 = vadd.f32 %v2249_v11, %v1587_v26 }
0x17fe   :  { %v1592_v48 = vsel %vm1591_vm9, %v2249_v11, %v1588_v24  ;;  %vm984_vm9 = vcmask 261122  }
0x17ff   :  { %v2919_v7 = vsel %vm1594_vm1, %v1596_v28, %v1592_v48  ;;  %v2253_v55 = vpop.eup %2252  ;;  %vm986_vm1 = vcmask 253952  }
0x1800   :  { %v1600_v19 = vmul.f32 %v2253_v55, %v1583_v21  ;;  %vm1605_vm12 = vweird.f32 %v2253_v55  ;;  %v2255_v34 = vpop.eup %2254  ;;  %v1623_v0 = vmul.f32 %v2902_v15, %v2919_v7 }
0x1801   :  { %vm1606_vm15 = vmor %vm1604_vm14, %vm1605_vm12  ;;  %v2257_v50 = vpop.eup %2256 }
0x1802   :  { %v1601_v36 = vsub.f32 1.0, %v1600_v19  ;;  %v1023_v52 = vadd.f32 1.0, %v2257_v50 }
0x1804   :  { %v1602_v37 = vmul.f32 %v2253_v55, %v1601_v36  ;;  %2258 = vrcp.f32 %v1023_v52  ;;  %v1035_v30 = vand.u32 2147483648, %v1023_v52  ;;  %vm1029_vm3 = vweird.f32 %v1023_v52 }
0x1805   :  { %v1033_v12 = vand.u32 2147483647, %v1023_v52 }
0x1806   :  { %v1603_v17 = vadd.f32 %v2253_v55, %v1602_v37  ;;  %v1036_v42 = vor.u32 1.1754944e-38, %v1035_v30 }
0x1807   :  { %vm1034_vm13 = vcmp.eq.f32.partialorder %v1033_v12, 8.507059e+37 }
0x1808   :  { %v1607_v44 = vsel %vm1606_vm15, %v2253_v55, %v1603_v17 }
0x1809   :  { %v1612_v41 = vsel %vm1609_vm5, %v1611_v45, %v1607_v44 }
0x180a   :  { %v2259_v43 = vpop.eup %2258  ;;  %v1624_v49 = vmul.f32 %v1619_v62, %v1612_v41 }
0x180b   :  { %v1025_v63 = vmul.f32 %v2259_v43, %v1023_v52  ;;  %vm1030_vm8 = vweird.f32 %v2259_v43 }
0x180c   :  { %vm1031_vm11 = vmor %vm1029_vm3, %vm1030_vm8 }
0x180d   :  { %v1026_v1 = vsub.f32 1.0, %v1025_v63 }
0x180f   :  { %v1027_v5 = vmul.f32 %v2259_v43, %v1026_v1 }
0x1811   :  { %v1028_v16 = vadd.f32 %v2259_v43, %v1027_v5 }
0x1813   :  { %v1032_v40 = vsel %vm1031_vm11, %v2259_v43, %v1028_v16  ;;  %vm1067_vm11 = vcmask 261121  }
0x1814   :  { %v2944_v10 = vsel %vm1034_vm13, %v1036_v42, %v1032_v40 }
0x1815   :  { %v1046_v18 = vmul.f32 %v2781_v23, %v2944_v10 }
0x1845   :  { %v1628_v2 = vpop.permute.xlu2 %1627 }
0x1846   :  { %v1633_v32 = vmul.f32 %v1628_v2, %v2919_v7  ;;  %v2967_v2 = vld [vmem:[%s3052_s8] ss:$0 sm:$0xff] }
0x1848   :  { %1637 = vrot.lane.b32.xlu1 %v1633_v32, %s2325_s20 }
0x185e   :  { %v1630_v39 = vpop.permute.xlu0 %1629 }
0x185f   :  { %v1634_v35 = vmul.f32 %v1630_v39, %v1612_v41 }
0x1861   :  { %1639 = vrot.lane.b32.xlu2 %v1634_v35, %s2325_s20 }
0x1869   :  { %854 = vrot.lane.b32.xlu2 %v2694_v31, %s2325_s20 }
0x1871   :  { %1048 = vrot.lane.b32.xlu2 %v2255_v34, %s2324_s19 }
0x18ba   :  { %v1638_v33 = vpop.permute.xlu1 %1637 }
0x18bb   :  { %v1643_v6 = vadd.f32 %v1638_v33, %v1623_v0  ;;  %v1640_v31 = vpop.permute.xlu2 %1639 }
0x18bc   :  { %v2933_v27 = vadd.f32 %v1640_v31, %v1624_v49 }
0x18bd   :  { %2260 = vtanh.f32 %v1643_v6  ;;  %v1733_v4 = vrot.slane %v1643_v6, 1 }
0x18be   :  { %2262 = vtanh.f32 %v2933_v27  ;;  %v1734_v14 = vrot.slane %v2933_v27, 1 }
0x18c0   :  { %v2940_v15 = vsel %vm433_vm2, %v1733_v4, %v1734_v14 }
0x18c3   :  { %v2261_v57 = vpop.eup %2260  ;;  %v855_v62 = vpop.permute.xlu2 %854 }
0x18c4   :  { %v2263_v60 = vpop.eup %2262  ;;  %861 = vst.msk [vmem:[#allocation2 + $0x28] sm:$0x3] %vm860_vm6, %v855_v62  ;;  %1649 = vrot.lane.b32.xlu0 %v2261_v57, %s2324_s19 }
0x18c5   :  { %1651 = vrot.lane.b32.xlu1 %v2263_v60, %s2324_s19 }
0x18cb   :  { %v1049_v8 = vpop.permute.xlu2 %1048 }
0x18cc   :  { %v1051_v51 = vmul.f32 %v1049_v8, %v2944_v10  ;;  %978 = vrot.lane.b32.xlu0 %v2793_v22, %s2325_s20 }
0x18ce   :  { %1053 = vrot.lane.b32.xlu2 %v1051_v51, %s2325_s20 }
0x1928   :  { %v1054_v25 = vpop.permute.xlu2 %1053 }
0x1929   :  { %v1056_v56 = vadd.f32 %v1054_v25, %v1046_v18 }
0x192b   :  { %2264 = vtanh.f32 %v1056_v56 }
0x1931   :  { %v2265_v11 = vpop.eup %2264 }
0x1932   :  { %1059 = vrot.lane.b32.xlu2 %v2265_v11, %s2324_s19 }
0x1936   :  { %v1650_v46 = vpop.permute.xlu0 %1649 }
0x1937   :  { %v1655_v53 = vmul.f32 %v1650_v46, %v2919_v7  ;;  %v1652_v9 = vpop.permute.xlu1 %1651 }
0x1938   :  { %v1656_v26 = vmul.f32 %v1652_v9, %v1612_v41 }
0x1939   :  { %v1659_v20 = vrot.slane %v1655_v53, 4 }
0x193a   :  { %v1660_v21 = vrot.slane %v1656_v26, 4  ;;  %980 = vrot.lane.b32.xlu2 %v2791_v61, %s2325_s20 }
0x193c   :  { %v1661_v22 = vsel %vm132_vm0, %v1659_v20, %v1660_v21 }
0x193d   :  { %1662 = vrot.lane.b32.xlu1 %v1661_v22, %s2325_s20 }
0x193e   :  { %v979_v23 = vpop.permute.xlu0 %978 }
0x193f   :  { %985 = vst.msk [vmem:[#allocation2 + $0x28] sm:$0xfc] %vm984_vm9, %v979_v23 }
0x1946   :  { %v1074_v24 = vld [vmem:[#allocation2 + $0x28] sm:$0xff] }
0x1947   :  { %2051 = vmatmul.msk.f32.gmra.mxu3 %vm174_vm7, %v1074_v24 }
0x198c   :  { %v2960_v58 = vpop.permute.xlu2 %1059 }
0x198d   :  { %v1062_v27 = vmul.f32 %v2960_v58, %v2944_v10 }
0x1994   :  { %v981_v3 = vpop.permute.xlu2 %980 }
0x1995   :  { %987 = vst.msk [vmem:[#allocation2 + $0x30] sm:$0x1] %vm986_vm1, %v981_v3 }
0x19af   :  { %v1663_v48 = vpop.permute.xlu1 %1662 }
0x19b0   :  { %2066 = vmatmul.msk.f32.vlgmr.msrb.gmra.mxu2 %vm174_vm7, %v1663_v48 }
0x19ca   :  { %v1141_v61 = vpop.f32.mrf.mxu3 }
0x19cb   :  { %v2970_v7 = vadd.f32 %v2967_v2, %v1141_v61 }
0x1a33   :  { %v1683_v28 = vpop.f32.mrf.mxu2 }
0x1a34   :  { %v1687_v32 = vrot.slane %v1683_v28, 5 }
0x1a36   :  { %v1689_v55 = vadd.f32 %v1687_v32, %v2913_v54  ;;  %v1690_v19 = vadd.f32 %v1687_v32, %v2970_v7 }
0x1a38   :  { %2266 = vtanh.f32 %v1689_v55  ;;  %v2067_v17 = vmul.f32 -1.442695, %v1689_v55  ;;  %v2068_v38 = vmul.f32 -1.442695, %v1690_v19 }
0x1a39   :  { %2268 = vtanh.f32 %v1690_v19 }
0x1a3a   :  { %2270 = vpow2.f32 %v2067_v17 }
0x1a3b   :  { %2272 = vpow2.f32 %v2068_v38 }
0x1a3e   :  { %v2267_v36 = vpop.eup %2266 }
0x1a3f   :  { %v2269_v37 = vpop.eup %2268  ;;  %1742 = vrot.lane.b32.xlu0 %v2267_v36, %s2324_s19 }
0x1a40   :  { %1744 = vrot.lane.b32.xlu1 %v2269_v37, %s2324_s19  ;;  %v2271_v13 = vpop.eup %2270 }
0x1a41   :  { %v2273_v44 = vpop.eup %2272  ;;  %v1697_v45 = vadd.f32 1.0, %v2271_v13 }
0x1a42   :  { %v1698_v39 = vadd.f32 1.0, %v2273_v44 }
0x1a43   :  { %2274 = vrcp.f32 %v1697_v45  ;;  %v1710_v63 = vand.u32 2147483648, %v1697_v45  ;;  %vm1704_vm14 = vweird.f32 %v1697_v45  ;;  %v1708_v33 = vand.u32 2147483647, %v1697_v45 }
0x1a44   :  { %2276 = vrcp.f32 %v1698_v39  ;;  %v1725_v0 = vand.u32 2147483648, %v1698_v39  ;;  %vm1719_vm15 = vweird.f32 %v1698_v39  ;;  %v1723_v49 = vand.u32 2147483647, %v1698_v39 }
0x1a45   :  { %v1711_v1 = vor.u32 1.1754944e-38, %v1710_v63  ;;  %vm1709_vm8 = vcmp.eq.f32.partialorder %v1708_v33, 8.507059e+37 }
0x1a46   :  { %v1726_v4 = vor.u32 1.1754944e-38, %v1725_v0  ;;  %vm1724_vm3 = vcmp.eq.f32.partialorder %v1723_v49, 8.507059e+37 }
0x1a49   :  { %v2275_v54 = vpop.eup %2274 }
0x1a4a   :  { %v2277_v41 = vpop.eup %2276  ;;  %v1700_v35 = vmul.f32 %v2275_v54, %v1697_v45  ;;  %vm1705_vm0 = vweird.f32 %v2275_v54 }
0x1a4b   :  { %v1715_v47 = vmul.f32 %v2277_v41, %v1698_v39  ;;  %vm1720_vm12 = vweird.f32 %v2277_v41  ;;  %vm1706_vm5 = vmor %vm1704_vm14, %vm1705_vm0 }
0x1a4c   :  { %v1701_v29 = vsub.f32 1.0, %v1700_v35  ;;  %vm1721_vm6 = vmor %vm1719_vm15, %vm1720_vm12 }
0x1a4d   :  { %v1716_v34 = vsub.f32 1.0, %v1715_v47 }
0x1a4e   :  { %v1702_v59 = vmul.f32 %v2275_v54, %v1701_v29 }
0x1a4f   :  { %v1717_v50 = vmul.f32 %v2277_v41, %v1716_v34 }
0x1a50   :  { %v1703_v52 = vadd.f32 %v2275_v54, %v1702_v59 }
0x1a51   :  { %v1718_v43 = vadd.f32 %v2277_v41, %v1717_v50 }
0x1a52   :  { %v1707_v6 = vsel %vm1706_vm5, %v2275_v54, %v1703_v52 }
0x1a53   :  { %v1722_v31 = vsel %vm1721_vm6, %v2277_v41, %v1718_v43  ;;  %v1712_v57 = vsel %vm1709_vm8, %v1711_v1, %v1707_v6 }
0x1a54   :  { %v1727_v60 = vsel %vm1724_vm3, %v1726_v4, %v1722_v31  ;;  %v1738_v12 = vmul.f32 %v2940_v15, %v1712_v57 }
0x1a55   :  { %v1739_v40 = vmul.f32 %v1734_v14, %v1727_v60 }
0x1ab1   :  { %v1743_v5 = vpop.permute.xlu0 %1742 }
0x1ab2   :  { %v1745_v62 = vpop.permute.xlu1 %1744  ;;  %v1748_v16 = vmul.f32 %v1743_v5, %v1712_v57 }
0x1ab3   :  { %v1749_v30 = vmul.f32 %v1745_v62, %v1727_v60 }
0x1ab4   :  { %1752 = vrot.lane.b32.xlu0 %v1748_v16, %s2325_s20 }
0x1ab5   :  { %1754 = vrot.lane.b32.xlu1 %v1749_v30, %s2325_s20 }
0x1b26   :  { %v1753_v42 = vpop.permute.xlu0 %1752 }
0x1b27   :  { %v1755_v8 = vpop.permute.xlu1 %1754  ;;  %v1758_v51 = vadd.f32 %v1753_v42, %v1738_v12 }
0x1b28   :  { %v2981_v18 = vadd.f32 %v1755_v8, %v1739_v40 }
0x1b29   :  { %2278 = vtanh.f32 %v1758_v51  ;;  %v1848_v25 = vrot.slane %v1758_v51, 1 }
0x1b2a   :  { %2280 = vtanh.f32 %v2981_v18  ;;  %v1849_v56 = vrot.slane %v2981_v18, 1 }
0x1b2c   :  { %v2988_v11 = vsel %vm433_vm2, %v1848_v25, %v1849_v56 }
0x1b2f   :  { %v2279_v15 = vpop.eup %2278 }
0x1b30   :  { %v2281_v46 = vpop.eup %2280  ;;  %1764 = vrot.lane.b32.xlu0 %v2279_v15, %s2324_s19 }
0x1b31   :  { %1766 = vrot.lane.b32.xlu1 %v2281_v46, %s2324_s19 }
0x1b38   :  { %1064 = vrot.lane.b32.xlu0 %v1062_v27, %s2325_s20 }
0x1ba2   :  { %v1765_v14 = vpop.permute.xlu0 %1764 }
0x1ba3   :  { %v1767_v53 = vpop.permute.xlu1 %1766  ;;  %v1770_v9 = vmul.f32 %v1765_v14, %v1712_v57 }
0x1ba4   :  { %v1771_v26 = vmul.f32 %v1767_v53, %v1727_v60 }
0x1ba5   :  { %v1774_v20 = vrot.slane %v1770_v9, 3 }
0x1ba6   :  { %v1775_v21 = vrot.slane %v1771_v26, 3 }
0x1ba8   :  { %v1776_v22 = vsel %vm862_vm10, %v1774_v20, %v1775_v21 }
0x1ba9   :  { %1777 = vrot.lane.b32.xlu1 %v1776_v22, %s2325_s20 }
0x1baa   :  { %v1065_v23 = vpop.permute.xlu0 %1064 }
0x1bab   :  { %1068 = vst.msk [vmem:[#allocation2 + $0x30] sm:$0xfe] %vm1067_vm11, %v1065_v23 }
0x1bb2   :  { %v1075_v24 = vld [vmem:[#allocation2 + $0x30] sm:$0xff] }
0x1bb3   :  { %2052 = vmatmul.msk.f32.gmra.mxu3 %vm174_vm7, %v1075_v24 }
0x1c1b   :  { %v1778_v10 = vpop.permute.xlu1 %1777 }
0x1c1c   :  { %2069 = vmatmul.msk.f32.vlgmr.msrb.gmra.mxu1 %vm174_vm7, %v1778_v10 }
0x1c36   :  { %v1144_v58 = vpop.f32.mrf.mxu3 }
0x1c37   :  { %v3001_v48 = vadd.f32 %v2967_v2, %v1144_v58 }
0x1c99   :  { %v1798_v3 = vpop.f32.mrf.mxu1 }
0x1c9a   :  { %v1802_v61 = vrot.slane %v1798_v3, 6 }
0x1c9c   :  { %v1804_v28 = vadd.f32 %v1802_v61, %v2970_v7  ;;  %v1805_v32 = vadd.f32 %v1802_v61, %v3001_v48 }
0x1c9e   :  { %2282 = vtanh.f32 %v1804_v28  ;;  %v2070_v36 = vmul.f32 -1.442695, %v1804_v28  ;;  %v2071_v38 = vmul.f32 -1.442695, %v1805_v32 }
0x1c9f   :  { %2284 = vtanh.f32 %v1805_v32 }
0x1ca0   :  { %2286 = vpow2.f32 %v2070_v36 }
0x1ca4   :  { %v2283_v55 = vpop.eup %2282 }
0x1ca5   :  { %v2285_v19 = vpop.eup %2284  ;;  %1857 = vrot.lane.b32.xlu2 %v2283_v55, %s2324_s19 }
0x1ca6   :  { %1859 = vrot.lane.b32.xlu0 %v2285_v19, %s2324_s19  ;;  %v2287_v37 = vpop.eup %2286 }
0x1ca7   :  { %v1812_v17 = vadd.f32 1.0, %v2287_v37 }
0x1ca9   :  { %2288 = vrcp.f32 %v1812_v17  ;;  %v1825_v41 = vand.u32 2147483648, %v1812_v17  ;;  %vm1819_vm13 = vweird.f32 %v1812_v17  ;;  %v1823_v35 = vand.u32 2147483647, %v1812_v17 }
0x1caa   :  { %2290 = vpow2.f32 %v2071_v38 }
0x1cab   :  { %v1826_v29 = vor.u32 1.1754944e-38, %v1825_v41  ;;  %vm1824_vm12 = vcmp.eq.f32.partialorder %v1823_v35, 8.507059e+37  ;;  %v1978_v41 = vld [vmem:[%s3053_s9 + $0x8] sm:$0xff]  ;;  %v1977_v35 = vld [vmem:[%s3053_s9] sm:$0xff] }
0x1caf   :  { %v2289_v2 = vpop.eup %2288 }
0x1cb0   :  { %v1815_v13 = vmul.f32 %v2289_v2, %v1812_v17  ;;  %v2291_v45 = vpop.eup %2290  ;;  %vm1820_vm10 = vweird.f32 %v2289_v2 }
0x1cb1   :  { %v1813_v39 = vadd.f32 1.0, %v2291_v45  ;;  %vm1821_vm0 = vmor %vm1819_vm13, %vm1820_vm10 }
0x1cb2   :  { %v1816_v7 = vsub.f32 1.0, %v1815_v13 }
0x1cb3   :  { %2292 = vrcp.f32 %v1813_v39  ;;  %v1840_v49 = vand.u32 2147483648, %v1813_v39  ;;  %vm1834_vm15 = vweird.f32 %v1813_v39  ;;  %v1838_v6 = vand.u32 2147483647, %v1813_v39 }
0x1cb4   :  { %v1817_v44 = vmul.f32 %v2289_v2, %v1816_v7 }
0x1cb5   :  { %v1841_v1 = vor.u32 1.1754944e-38, %v1840_v49  ;;  %vm1839_vm6 = vcmp.eq.f32.partialorder %v1838_v6, 8.507059e+37 }
0x1cb6   :  { %v1818_v54 = vadd.f32 %v2289_v2, %v1817_v44 }
0x1cb8   :  { %v1822_v47 = vsel %vm1821_vm0, %v2289_v2, %v1818_v54  ;;  %v1979_v54 = vld [vmem:[%s3053_s9 + $0x10] sm:$0xff] }
0x1cb9   :  { %v1827_v34 = vsel %vm1824_vm12, %v1826_v29, %v1822_v47  ;;  %v2293_v52 = vpop.eup %2292 }
0x1cba   :  { %v1830_v43 = vmul.f32 %v2293_v52, %v1813_v39  ;;  %vm1835_vm14 = vweird.f32 %v2293_v52  ;;  %v1853_v62 = vmul.f32 %v2988_v11, %v1827_v34  ;;  %v1980_v39 = vld [vmem:[%s3053_s9 + $0x18] sm:$0xff] }
0x1cbb   :  { %vm1836_vm5 = vmor %vm1834_vm15, %vm1835_vm14  ;;  %2000 = vmatpush.msrb.mxu0 %v1980_v39 }
0x1cbc   :  { %v1831_v63 = vsub.f32 1.0, %v1830_v43 }
0x1cbd   :  { %2001 = vmatpush.msrb.mxu0 %v1979_v54 }
0x1cbe   :  { %v1832_v0 = vmul.f32 %v2293_v52, %v1831_v63 }
0x1cbf   :  { %2002 = vmatpush.msrb.mxu0 %v1978_v41 }
0x1cc0   :  { %v1833_v33 = vadd.f32 %v2293_v52, %v1832_v0 }
0x1cc1   :  { %2003 = vmatpush.msrb.mxu0 %v1977_v35 }
0x1cc2   :  { %v1837_v31 = vsel %vm1836_vm5, %v2293_v52, %v1833_v33  ;;  %v2081_v52 = vld [vmem:[#allocation3] ss:$0 sm:$0xff] }
0x1cc3   :  { %v1842_v5 = vsel %vm1839_vm6, %v1841_v1, %v1837_v31 }
0x1cc4   :  { %v1854_v16 = vmul.f32 %v1849_v56, %v1842_v5 }
0x1cff   :  { %v1858_v59 = vpop.permute.xlu2 %1857 }
0x1d00   :  { %v1863_v50 = vmul.f32 %v1858_v59, %v1827_v34 }
0x1d02   :  { %1867 = vrot.lane.b32.xlu1 %v1863_v50, %s2325_s20 }
0x1d18   :  { %v1860_v4 = vpop.permute.xlu0 %1859 }
0x1d19   :  { %v1864_v57 = vmul.f32 %v1860_v4, %v1842_v5 }
0x1d1b   :  { %1869 = vrot.lane.b32.xlu2 %v1864_v57, %s2325_s20 }
0x1d74   :  { %v1868_v60 = vpop.permute.xlu1 %1867 }
0x1d75   :  { %v1873_v30 = vadd.f32 %v1868_v60, %v1853_v62  ;;  %v1870_v12 = vpop.permute.xlu2 %1869 }
0x1d76   :  { %v1874_v40 = vadd.f32 %v1870_v12, %v1854_v16 }
0x1d77   :  { %2294 = vtanh.f32 %v1873_v30  ;;  %v1950_v42 = vrot.slane %v1873_v30, 1 }
0x1d78   :  { %2296 = vtanh.f32 %v1874_v40  ;;  %v1951_v8 = vrot.slane %v1874_v40, 1 }
0x1d7a   :  { %v1952_v51 = vsel %vm433_vm2, %v1950_v42, %v1951_v8 }
0x1d7d   :  { %v2295_v25 = vpop.eup %2294 }
0x1d7e   :  { %v2297_v15 = vpop.eup %2296  ;;  %1879 = vrot.lane.b32.xlu0 %v2295_v25, %s2324_s19 }
0x1d7f   :  { %1881 = vrot.lane.b32.xlu1 %v2297_v15, %s2324_s19 }
0x1df0   :  { %v1880_v11 = vpop.permute.xlu0 %1879 }
0x1df1   :  { %v1885_v46 = vmul.f32 %v1880_v11, %v1827_v34  ;;  %v1882_v27 = vpop.permute.xlu1 %1881 }
0x1df2   :  { %v1886_v18 = vmul.f32 %v1882_v27, %v1842_v5 }
0x1df3   :  { %v1897_v56 = vrot.slane %v1885_v46, 2 }
0x1df4   :  { %v1898_v14 = vrot.slane %v1886_v18, 2 }
0x1df6   :  { %v1899_v53 = vsel %vm988_vm4, %v1897_v56, %v1898_v14 }
0x1df7   :  { %1900 = vrot.lane.b32.xlu2 %v1899_v53, %s2325_s20 }
0x1e51   :  { %v1901_v9 = vpop.permute.xlu2 %1900 }
0x1e52   :  { %2072 = vmatmul.msk.f32.vlgmr.msra.gmra.mxu2 %vm174_vm7, %v1901_v9 }
0x1ed5   :  { %v1921_v26 = vpop.f32.mrf.mxu2 }
0x1ed6   :  { %v1925_v20 = vrot.slane %v1921_v26, 7 }
0x1ed8   :  { %v1927_v21 = vadd.f32 %v1925_v20, %v3001_v48 }
0x1eda   :  { %2298 = vtanh.f32 %v1927_v21  ;;  %v2073_v23 = vmul.f32 -1.442695, %v1927_v21 }
0x1edc   :  { %2300 = vpow2.f32 %v2073_v23 }
0x1ee0   :  { %v2299_v22 = vpop.eup %2298 }
0x1ee1   :  { %1956 = vrot.lane.b32.xlu0 %v2299_v22, %s2324_s19 }
0x1ee2   :  { %v2301_v24 = vpop.eup %2300 }
0x1ee3   :  { %v1931_v10 = vadd.f32 1.0, %v2301_v24 }
0x1ee5   :  { %2302 = vrcp.f32 %v1931_v10  ;;  %v1943_v55 = vand.u32 2147483648, %v1931_v10  ;;  %vm1937_vm4 = vweird.f32 %v1931_v10  ;;  %v1941_v48 = vand.u32 2147483647, %v1931_v10 }
0x1ee7   :  { %v1944_v36 = vor.u32 1.1754944e-38, %v1943_v55  ;;  %vm1942_vm3 = vcmp.eq.f32.partialorder %v1941_v48, 8.507059e+37 }
0x1ee9   :  { %1891 = vrot.lane.b32.xlu0 %v1886_v18, %s2325_s20 }
0x1eeb   :  { %v2303_v58 = vpop.eup %2302 }
0x1eec   :  { %v1933_v3 = vmul.f32 %v2303_v58, %v1931_v10  ;;  %vm1938_vm2 = vweird.f32 %v2303_v58 }
0x1eed   :  { %vm1939_vm8 = vmor %vm1937_vm4, %vm1938_vm2 }
0x1eee   :  { %v1934_v61 = vsub.f32 1.0, %v1933_v3 }
0x1ef0   :  { %v1935_v28 = vmul.f32 %v2303_v58, %v1934_v61 }
0x1ef2   :  { %v1936_v32 = vadd.f32 %v2303_v58, %v1935_v28 }
0x1ef4   :  { %v1940_v19 = vsel %vm1939_vm8, %v2303_v58, %v1936_v32 }
0x1ef5   :  { %v1945_v17 = vsel %vm1942_vm3, %v1944_v36, %v1940_v19 }
0x1ef6   :  { %v1954_v13 = vmul.f32 %v1952_v51, %v1945_v17 }
0x1f53   :  { %v1957_v37 = vpop.permute.xlu0 %1956 }
0x1f54   :  { %v1959_v2 = vmul.f32 %v1957_v37, %v1945_v17 }
0x1f56   :  { %1961 = vrot.lane.b32.xlu1 %v1959_v2, %s2325_s20 }
0x1f5b   :  { %v1892_v38 = vpop.permute.xlu0 %1891 }
0x1f5c   :  { %1896 = vst.msk [vmem:[#allocation2 + $0x30] sm:$0x1] %vm986_vm1, %v1892_v38  ;;  %vm2008_vm1 = vcmask 7168  }
0x1fc8   :  { %v1962_v7 = vpop.permute.xlu1 %1961 }
0x1fc9   :  { %v1964_v44 = vadd.f32 %v1962_v7, %v1954_v13 }
0x1fcb   :  { %2304 = vtanh.f32 %v1964_v44 }
0x1fd1   :  { %v2305_v45 = vpop.eup %2304 }
0x1fd2   :  { %1967 = vrot.lane.b32.xlu2 %v2305_v45, %s2324_s19 }
0x1fda   :  { %1889 = vrot.lane.b32.xlu2 %v1885_v46, %s2325_s20 }
0x202c   :  { %v1968_v47 = vpop.permute.xlu2 %1967 }
0x202d   :  { %v1970_v29 = vmul.f32 %v1968_v47, %v1945_v17 }
0x202f   :  { %1972 = vrot.lane.b32.xlu1 %v1970_v29, %s2325_s20 }
0x2034   :  { %v1890_v34 = vpop.permute.xlu2 %1889 }
0x2035   :  { %1895 = vst.msk [vmem:[#allocation2 + $0x28] sm:$0xfc] %vm984_vm9, %v1890_v34 }
0x20a1   :  { %v1973_v59 = vpop.permute.xlu1 %1972 }
0x20a2   :  { %1975 = vst.msk [vmem:[#allocation2 + $0x30] sm:$0xfe] %vm1067_vm11, %v1973_v59 }
0x20a9   :  { %v1976_v50 = vld [vmem:[#allocation2 + $0x30] sm:$0xff] }
0x20aa   :  { %2074 = vmatmul.msk.f32.vlgmr.msrb.gmra.mxu0 %vm174_vm7, %v1976_v50 }
0x2127   :  { %v2005_v43 = vpop.f32.mrf.mxu0 }
0x2128   :  { %v2006_v63 = vadd.f32 %v2081_v52, %v2005_v43 }
0x212a   :  { %2009 = vst.msk [vmem:[%s3055_s11] sm:$0xff] %vm2008_vm1, %v2006_v63 }
0x212b   :  { %2014 = vsyncpa [#allocation5], 1 }

</bundles_post_ra>
